<compile_context>
chip_gen: v7x
topology: tpu7x:2x2x1
jax: 0.10.0
libtpu: 0.0.40
codegen_flags: <defaults>
</compile_context>

<pallas_src>
import functools

import jax
import jax.numpy as jnp
from jax import lax
from jax.experimental import pallas as pl
from jax.experimental.pallas import tpu as pltpu

# Flip to jnp.bfloat16 for ~2x MXU throughput / half HBM traffic on the
# projection matmul (accumulation stays f32 via preferred_element_type).
# Kept f32 by default to match the PyTorch reference numerics exactly.
MATMUL_DTYPE = jnp.float32


# ----------------------------- helpers --------------------------------------

def _round_up(x, m):
    return ((x + m - 1) // m) * m


def _pad_gate_cols(mat, hidden, hp):
    """(rows, 4*hidden) -> (rows, 4*hp): pad each gate block (i|f|g|o) to hp
    lanes with zeros so gate slices in the kernel are 128-lane aligned."""
    rows = mat.shape[0]
    m4 = mat.reshape(rows, 4, hidden)
    out = jnp.zeros((rows, 4, hp), mat.dtype).at[:, :, :hidden].set(m4)
    return out.reshape(rows, 4 * hp)


def _lstm_vmem_bytes(tc, d_in, hp, rank):
    f = 4
    inputs = 2 * (tc * d_in + d_in * 4 * hp + hp * 4 * hp + 4 * hp + 2 * hp) * f
    outputs = 2 * tc * rank * f
    scratch = (tc * 4 * hp + tc * hp + 2 * hp) * f
    return min(int(inputs + outputs + scratch) + (8 << 20), 64 << 20)


# ----------------------------- Pallas kernels -------------------------------

def _matmul_kernel(a_ref, b_ref, out_ref):
    out_ref[...] = jnp.dot(a_ref[...], b_ref[...],
                           preferred_element_type=jnp.float32)


def _make_lstm_kernel(hidden, hp, rank, tc, unroll_rows=8):
    """LSTM recurrence + LayerNorm + [:, :rank] over one time chunk.

    Refs:
      inp_ref   : (tc, d_in)        streamed time chunk
      wih_ref   : (d_in, 4*hp)      gates i|f|g|o, each lane-padded to hp
      whh_ref   : (hp, 4*hp)        rows [hidden:hp] are zero
      b_ref     : (1, 4*hp)         combined bias (b_ih + b_hh), lane-padded
      gamma/beta: (1, hp)
      out_ref   : (tc, rank)
      scratch   : xproj (tc,4*hp), h_all (tc,hp), h_carry (1,hp), c_carry (1,hp)
    """

    def kernel(inp_ref, wih_ref, whh_ref, b_ref, gamma_ref, beta_ref,
               out_ref, xproj_ref, h_all_ref, h_carry_ref, c_carry_ref):
        # ---- init persistent recurrent state on the first chunk ----
        @pl.when(pl.program_id(0) == 0)
        def _():
            h_carry_ref[...] = jnp.zeros_like(h_carry_ref)
            c_carry_ref[...] = jnp.zeros_like(c_carry_ref)

        # ---- (1) input-side gate pre-activations for this chunk ----
        xproj_ref[...] = (
            jnp.dot(inp_ref[...], wih_ref[...],
                    preferred_element_type=jnp.float32)
            + b_ref[...])

        whh = whh_ref[...]                              # (hp, 4*hp)

        # ---- (2) serial recurrence, 8-step unrolled blocks ----
        # TODO(synk): on v5e/v6e, pltpu.matmul_push_rhs/matmul_acc_lhs could
        # keep whh resident in MXU weight registers across steps.
        def block_step(blk, carry):
            h, c = carry
            base = pl.multiple_of(blk * unroll_rows, unroll_rows)
            rows = []
            for s in range(unroll_rows):
                gates = xproj_ref[pl.ds(base + s, 1), :] + jnp.dot(
                    h, whh, preferred_element_type=jnp.float32)   # (1, 4*hp)
                i_g = jax.nn.sigmoid(gates[:, 0 * hp:1 * hp])
                f_g = jax.nn.sigmoid(gates[:, 1 * hp:2 * hp])
                g_g = jnp.tanh(gates[:, 2 * hp:3 * hp])
                o_g = jax.nn.sigmoid(gates[:, 3 * hp:4 * hp])
                c = f_g * c + i_g * g_g
                h = o_g * jnp.tanh(c)                   # (1, hp), pad lanes = 0
                rows.append(h)
            # One sublane-dense (8, hp) store instead of eight masked 1-row stores.
            h_all_ref[pl.ds(base, unroll_rows), :] = jnp.concatenate(rows, axis=0)
            return (h, c)

        h0 = h_carry_ref[...]
        c0 = c_carry_ref[...]
        h_f, c_f = lax.fori_loop(0, tc // unroll_rows, block_step, (h0, c0))
        h_carry_ref[...] = h_f
        c_carry_ref[...] = c_f

        # ---- (3) vectorized LayerNorm over the chunk (eps=1e-5), slice rank ----
        h_all = h_all_ref[...]                          # (tc, hp)
        lane = lax.broadcasted_iota(jnp.int32, (tc, hp), 1)
        valid = lane < hidden
        inv_h = jnp.float32(1.0 / hidden)
        mu = jnp.sum(h_all, axis=-1, keepdims=True) * inv_h    # pad lanes are 0
        diff = h_all - mu
        diff_m = jnp.where(valid, diff, 0.0)
        var = jnp.sum(diff_m * diff_m, axis=-1, keepdims=True) * inv_h
        h_norm = diff * lax.rsqrt(var + 1e-5) * gamma_ref[...] + beta_ref[...]
        out_ref[...] = h_norm[:, :rank]

    return kernel


# ----------------------------- wrappers --------------------------------------

def project_pallas(W, X_T):
    """mat_hat = W @ X^T with entity/time tiling and lane-dense output tiles.
    Inputs are padded (E to mult of 8, T to mult of 128) instead of falling
    back to full-extent blocks; the pad region is sliced off afterwards."""
    E, R = W.shape
    T = X_T.shape[1]
    tm = min(512, _round_up(E, 8))
    tn = min(512, _round_up(T, 128))
    E_pad = _round_up(E, tm)
    T_pad = _round_up(T, tn)
    Wp = W if E_pad == E else jnp.pad(W, ((0, E_pad - E), (0, 0)))
    Xp = X_T if T_pad == T else jnp.pad(X_T, ((0, 0), (0, T_pad - T)))

    out = pl.pallas_call(
        _matmul_kernel,
        out_shape=jax.ShapeDtypeStruct((E_pad, T_pad), jnp.float32),
        grid_spec=pltpu.PrefetchScalarGridSpec(
            num_scalar_prefetch=0,
            grid=(E_pad // tm, T_pad // tn),
            in_specs=[pl.BlockSpec((tm, R), lambda i, j: (i, 0)),
                      pl.BlockSpec((R, tn), lambda i, j: (0, j))],
            out_specs=pl.BlockSpec((tm, tn), lambda i, j: (i, j))),
        compiler_params=pltpu.CompilerParams(
            dimension_semantics=("parallel", "parallel")),
    )(Wp.astype(MATMUL_DTYPE), Xp.astype(MATMUL_DTYPE))
    return out[:E, :T].astype(jnp.float32)


def lstm_ln_pallas(lstm_input, W_ih, W_hh, b, gamma, beta, rank):
    n_time, d_in = lstm_input.shape
    hidden = W_hh.shape[0]
    hp = _round_up(hidden, 128)

    # Lane-pad gate blocks; pad W_hh rows to hp with zeros (inert).
    wih_p = _pad_gate_cols(W_ih, hidden, hp)
    whh_p = jnp.zeros((hp, 4 * hp), jnp.float32).at[:hidden, :].set(
        _pad_gate_cols(W_hh, hidden, hp))
    b_p = _pad_gate_cols(b, hidden, hp)
    gamma_p = jnp.zeros((1, hp), jnp.float32).at[:, :hidden].set(gamma)
    beta_p = jnp.zeros((1, hp), jnp.float32).at[:, :hidden].set(beta)

    # Time chunking: VMEM footprint is O(Tc * 4*hp) regardless of n_time.
    tc = min(512, _round_up(n_time, 8))
    n_time_pad = _round_up(n_time, tc)
    if n_time_pad != n_time:
        lstm_input = jnp.pad(lstm_input, ((0, n_time_pad - n_time), (0, 0)))

    kernel = _make_lstm_kernel(hidden, hp, rank, tc)

    out = pl.pallas_call(
        kernel,
        out_shape=jax.ShapeDtypeStruct((n_time_pad, rank), jnp.float32),
        grid_spec=pltpu.PrefetchScalarGridSpec(
            num_scalar_prefetch=0,
            grid=(n_time_pad // tc,),
            in_specs=[pl.BlockSpec((tc, d_in), lambda t: (t, 0)),
                      pl.BlockSpec((d_in, 4 * hp), lambda t: (0, 0)),
                      pl.BlockSpec((hp, 4 * hp), lambda t: (0, 0)),
                      pl.BlockSpec((1, 4 * hp), lambda t: (0, 0)),
                      pl.BlockSpec((1, hp), lambda t: (0, 0)),
                      pl.BlockSpec((1, hp), lambda t: (0, 0))],
            out_specs=pl.BlockSpec((tc, rank), lambda t: (t, 0)),
            scratch_shapes=[pltpu.VMEM((tc, 4 * hp), jnp.float32),
                            pltpu.VMEM((tc, hp), jnp.float32),
                            pltpu.VMEM((1, hp), jnp.float32),
                            pltpu.VMEM((1, hp), jnp.float32)]),
        compiler_params=pltpu.CompilerParams(
            dimension_semantics=("arbitrary",),
            vmem_limit_bytes=_lstm_vmem_bytes(tc, d_in, hp, rank)),
    )(lstm_input, wih_p, whh_p, b_p, gamma_p, beta_p)
    return out[:n_time]


def btmf_forward(params, weather_feat, time_lags):
    n_time, rank = params["X_ar"].shape
    tmax = max(time_lags)
    X_ar = params["X_ar"]

    # --- AR part (tiny: plain XLA dot fuses with the surrounding glue) ---
    Z = X_ar[tmax:, :]
    Q = jnp.concatenate(
        [X_ar[tmax - lag: n_time - lag, :] for lag in time_lags], axis=1)
    pred_ar = jnp.dot(Q, params["A"])

    # --- LSTM part (Pallas, chunked over time) ---
    X_seq = jnp.broadcast_to(params["X_init"], (n_time, rank))
    lstm_input = jnp.concatenate([X_seq, weather_feat], axis=1)
    X_lstm = lstm_ln_pallas(lstm_input, params["W_ih"], params["W_hh"],
                            params["b"], params["ln_gamma"], params["ln_beta"],
                            rank)

    # --- fusion (tiny elementwise, XLA) + tiled projection (Pallas) ---
    alpha = jax.nn.sigmoid(params["alpha"])               # (n_time, 1)
    X = alpha * X_ar + (1.0 - alpha) * X_lstm              # (n_time, rank)
    mat_hat = project_pallas(params["W"], X.T)             # (n_entity, n_time)
    return mat_hat, Z, pred_ar, X_ar, X_lstm, X, alpha


# ----------------------------- parameter init --------------------------------

def init_params(key, n_entity, n_time, rank, d, wf_dim):
    hidden = 2 * rank
    d_in = rank + wf_dim
    ks = jax.random.split(key, 7)
    return {
        "W":      0.1 * jax.random.normal(ks[0], (n_entity, rank), jnp.float32),
        "A":      0.1 * jax.random.normal(ks[1], (rank * d, rank), jnp.float32),
        "X_ar":   0.1 * jax.random.normal(ks[2], (n_time, rank), jnp.float32),
        "X_init": 0.1 * jax.random.normal(ks[3], (1, rank), jnp.float32),
        "alpha":  0.8 * jnp.ones((n_time, 1), jnp.float32),
        # LSTM weights: pre-transposed, gates packed i|f|g|o along the lane axis.
        "W_ih":   0.1 * jax.random.normal(ks[4], (d_in, 4 * hidden), jnp.float32),
        "W_hh":   0.1 * jax.random.normal(ks[5], (hidden, 4 * hidden), jnp.float32),
        "b":      0.1 * jax.random.normal(ks[6], (1, 4 * hidden), jnp.float32),
        "ln_gamma": jnp.ones((1, hidden), jnp.float32),
        "ln_beta":  jnp.zeros((1, hidden), jnp.float32),
    }


# ----------------------------- main -------------------------------------------

if __name__ == "__main__":
    n_entity, n_time, rank = 16, 16, 8
    time_lags = (1, 2)
    wf_dim = 4

    key = jax.random.PRNGKey(0)
    pkey, wkey = jax.random.split(key)
    params = init_params(pkey, n_entity, n_time, rank, len(time_lags), wf_dim)
    weather_feat = 0.1 * jax.random.normal(wkey, (n_time, wf_dim), jnp.float32)

    fwd = jax.jit(functools.partial(btmf_forward, time_lags=time_lags))
    outs = fwd(params, weather_feat)
    outs = jax.block_until_ready(outs)

    mat_hat, Z, pred_ar, X_ar, X_lstm, X, alpha = outs
    tmax = max(time_lags)
    assert mat_hat.shape == (n_entity, n_time)
    assert Z.shape == (n_time - tmax, rank)
    assert pred_ar.shape == (n_time - tmax, rank)
    assert X_ar.shape == (n_time, rank)
    assert X_lstm.shape == (n_time, rank)
    assert X.shape == (n_time, rank)
    assert alpha.shape == (n_time, 1)
    assert bool(jnp.all(jnp.isfinite(mat_hat)))
    assert bool(jnp.all(jnp.isfinite(X_lstm)))

    print("KERNEL_OK")
</pallas_src>

<mosaic_0001>
module attributes {stable_mosaic.version = 11 : i64} {
  func.func @_matmul_kernel(%arg0: i32, %arg1: i32, %arg2: memref<16x8xf32, #tpu.memory_space<vmem>>, %arg3: memref<8x128xf32, #tpu.memory_space<vmem>>, %arg4: memref<16x128xf32, #tpu.memory_space<vmem>>) attributes {dimension_semantics = [#tpu.dimension_semantics<parallel>, #tpu.dimension_semantics<parallel>], iteration_bounds = array<i64: 1, 1>, scalar_prefetch = 0 : i64, scratch_operands = 0 : i64, tpu.core_type = #tpu.core_type<tc>, window_params = [{transform_indices = @transform_0, window_bounds = array<i64: 16, 8>}, {transform_indices = @transform_1, window_bounds = array<i64: 8, 128>}, {transform_indices = @transform_2, window_bounds = array<i64: 16, 128>}]} {
    %c0 = arith.constant 0 : index
    %c0_0 = arith.constant 0 : index
    %0 = vector.load %arg2[%c0, %c0_0] : memref<16x8xf32, #tpu.memory_space<vmem>>, vector<16x8xf32>
    %c0_1 = arith.constant 0 : index
    %c0_2 = arith.constant 0 : index
    %1 = vector.load %arg3[%c0_1, %c0_2] : memref<8x128xf32, #tpu.memory_space<vmem>>, vector<8x128xf32>
    %cst = arith.constant dense<0.000000e+00> : vector<16x128xf32>
    %2 = tpu.matmul %0, %1, %cst {dimension_numbers = #tpu.dot_dimension_numbers<[1], [0], [0], [1], [0, 0, 1, 1], [], []>} : vector<16x8xf32>, vector<8x128xf32>, vector<16x128xf32> -> vector<16x128xf32>
    %c0_3 = arith.constant 0 : index
    %c0_4 = arith.constant 0 : index
    %3 = vector.load %arg4[%c0_3, %c0_4] : memref<16x128xf32, #tpu.memory_space<vmem>>, vector<16x128xf32>
    tpu.vector_store %arg4[%c0_3, %c0_4], %2 {strides = array<i32>} : memref<16x128xf32, #tpu.memory_space<vmem>>, vector<16x128xf32>,
    return
  }
  func.func @transform_0(%arg0: i32, %arg1: i32) -> (i32, i32) {
    %c0_i32 = arith.constant 0 : i32
    %c0_i32_0 = arith.constant 0 : i32
    return %arg0, %c0_i32 : i32, i32
  }
  func.func @transform_1(%arg0: i32, %arg1: i32) -> (i32, i32) {
    %c0_i32 = arith.constant 0 : i32
    %c0_i32_0 = arith.constant 0 : i32
    return %c0_i32, %arg1 : i32, i32
  }
  func.func @transform_2(%arg0: i32, %arg1: i32) -> (i32, i32) {
    %c0_i32 = arith.constant 0 : i32
    return %arg0, %arg1 : i32, i32
  }
}

module attributes {stable_mosaic.version = 11 : i64} {
  func.func @kernel(%arg0: i32, %arg1: memref<16x12xf32, #tpu.memory_space<vmem>>, %arg2: memref<12x512xf32, #tpu.memory_space<vmem>>, %arg3: memref<128x512xf32, #tpu.memory_space<vmem>>, %arg4: memref<1x512xf32, #tpu.memory_space<vmem>>, %arg5: memref<1x128xf32, #tpu.memory_space<vmem>>, %arg6: memref<1x128xf32, #tpu.memory_space<vmem>>, %arg7: memref<16x8xf32, #tpu.memory_space<vmem>>, %arg8: memref<16x512xf32, #tpu.memory_space<vmem>>, %arg9: memref<16x128xf32, #tpu.memory_space<vmem>>, %arg10: memref<1x128xf32, #tpu.memory_space<vmem>>, %arg11: memref<1x128xf32, #tpu.memory_space<vmem>>) attributes {dimension_semantics = [#tpu.dimension_semantics<arbitrary>], iteration_bounds = array<i64: 1>, scalar_prefetch = 0 : i64, scratch_operands = 4 : i64, tpu.core_type = #tpu.core_type<tc>, window_params = [{transform_indices = @transform_0, window_bounds = array<i64: 16, 12>}, {pipeline_mode = #tpu.pipeline_mode<synchronous>, transform_indices = @transform_1, window_bounds = array<i64: 12, 512>}, {pipeline_mode = #tpu.pipeline_mode<synchronous>, transform_indices = @transform_2, window_bounds = array<i64: 128, 512>}, {pipeline_mode = #tpu.pipeline_mode<synchronous>, transform_indices = @transform_3, window_bounds = array<i64: 1, 512>}, {pipeline_mode = #tpu.pipeline_mode<synchronous>, transform_indices = @transform_4, window_bounds = array<i64: 1, 128>}, {pipeline_mode = #tpu.pipeline_mode<synchronous>, transform_indices = @transform_5, window_bounds = array<i64: 1, 128>}, {transform_indices = @transform_6, window_bounds = array<i64: 16, 8>}]} {
    %c0_i32 = arith.constant 0 : i32
    %0 = arith.cmpi eq, %arg0, %c0_i32 : i32
    %1 = arith.extui %0 : i1 to i32
    %c0_i32_0 = arith.constant 0 : i32
    %2 = arith.cmpi ne, %1, %c0_i32_0 : i32
    scf.if %2 {
      %cst_34 = arith.constant 0.000000e+00 : f32
      %47 = vector.broadcast %cst_34 : f32 to vector<1x128xf32>
      %c0_35 = arith.constant 0 : index
      %c0_36 = arith.constant 0 : index
      %48 = vector.load %arg10[%c0_35, %c0_36] : memref<1x128xf32, #tpu.memory_space<vmem>>, vector<1x128xf32>
      tpu.vector_store %arg10[%c0_35, %c0_36], %47 {strides = array<i32>} : memref<1x128xf32, #tpu.memory_space<vmem>>, vector<1x128xf32>,
      %cst_37 = arith.constant 0.000000e+00 : f32
      %49 = vector.broadcast %cst_37 : f32 to vector<1x128xf32>
      %c0_38 = arith.constant 0 : index
      %c0_39 = arith.constant 0 : index
      %50 = vector.load %arg11[%c0_38, %c0_39] : memref<1x128xf32, #tpu.memory_space<vmem>>, vector<1x128xf32>
      tpu.vector_store %arg11[%c0_38, %c0_39], %49 {strides = array<i32>} : memref<1x128xf32, #tpu.memory_space<vmem>>, vector<1x128xf32>,
    } else {
    }
    %c0 = arith.constant 0 : index
    %c0_1 = arith.constant 0 : index
    %3 = vector.load %arg1[%c0, %c0_1] : memref<16x12xf32, #tpu.memory_space<vmem>>, vector<16x12xf32>
    %c0_2 = arith.constant 0 : index
    %c0_3 = arith.constant 0 : index
    %4 = vector.load %arg2[%c0_2, %c0_3] : memref<12x512xf32, #tpu.memory_space<vmem>>, vector<12x512xf32>
    %cst = arith.constant dense<0.000000e+00> : vector<16x512xf32>
    %5 = tpu.matmul %3, %4, %cst {dimension_numbers = #tpu.dot_dimension_numbers<[1], [0], [0], [1], [0, 0, 1, 1], [], []>} : vector<16x12xf32>, vector<12x512xf32>, vector<16x512xf32> -> vector<16x512xf32>
    %c0_4 = arith.constant 0 : index
    %c0_5 = arith.constant 0 : index
    %6 = vector.load %arg4[%c0_4, %c0_5] : memref<1x512xf32, #tpu.memory_space<vmem>>, vector<1x512xf32>
    %7 = vector.broadcast %6 : vector<1x512xf32> to vector<16x512xf32>
    %8 = arith.addf %5, %7 : vector<16x512xf32>
    %c0_6 = arith.constant 0 : index
    %c0_7 = arith.constant 0 : index
    %9 = vector.load %arg8[%c0_6, %c0_7] : memref<16x512xf32, #tpu.memory_space<vmem>>, vector<16x512xf32>
    tpu.vector_store %arg8[%c0_6, %c0_7], %8 {strides = array<i32>} : memref<16x512xf32, #tpu.memory_space<vmem>>, vector<16x512xf32>,
    %c0_8 = arith.constant 0 : index
    %c0_9 = arith.constant 0 : index
    %10 = vector.load %arg3[%c0_8, %c0_9] : memref<128x512xf32, #tpu.memory_space<vmem>>, vector<128x512xf32>
    %c0_10 = arith.constant 0 : index
    %c0_11 = arith.constant 0 : index
    %11 = vector.load %arg10[%c0_10, %c0_11] : memref<1x128xf32, #tpu.memory_space<vmem>>, vector<1x128xf32>
    %c0_12 = arith.constant 0 : index
    %c0_13 = arith.constant 0 : index
    %12 = vector.load %arg11[%c0_12, %c0_13] : memref<1x128xf32, #tpu.memory_space<vmem>>, vector<1x128xf32>
    %c0_i32_14 = arith.constant 0 : i32
    %c2_i32 = arith.constant 2 : i32
    %13 = arith.addi %c0_i32_14, %c2_i32 : i32
    %c1_i32 = arith.constant 1 : i32
    %14:2 = scf.for %arg12 = %c0_i32_14 to %13 step %c1_i32 iter_args(%arg13 = %11, %arg14 = %12) -> (vector<1x128xf32>, vector<1x128xf32>)  : i32 {
      %c8_i32 = arith.constant 8 : i32
      %47 = arith.muli %arg12, %c8_i32 : i32
      %48 = tpu.assume_multiple %47, 8 : i32
      %c0_i32_34 = arith.constant 0 : i32
      %49 = arith.addi %48, %c0_i32_34 : i32
      %50 = arith.index_cast %49 : i32 to index
      %c0_35 = arith.constant 0 : index
      %51 = vector.load %arg8[%50, %c0_35] : memref<16x512xf32, #tpu.memory_space<vmem>>, vector<1x512xf32>
      %cst_36 = arith.constant dense<0.000000e+00> : vector<1x512xf32>
      %52 = tpu.matmul %arg13, %10, %cst_36 {dimension_numbers = #tpu.dot_dimension_numbers<[1], [0], [0], [1], [0, 0, 1, 1], [], []>} : vector<1x128xf32>, vector<128x512xf32>, vector<1x512xf32> -> vector<1x512xf32>
      %53 = arith.addf %51, %52 : vector<1x512xf32>
      %54 = vector.extract_strided_slice %53 {offsets = [0, 0], sizes = [1, 128], strides = [1, 1]} : vector<1x512xf32> to vector<1x128xf32>
      %55 = arith.negf %54 : vector<1x128xf32>
      %56 = math.exp %55 : vector<1x128xf32>
      %cst_37 = arith.constant 1.000000e+00 : f32
      %57 = vector.broadcast %cst_37 : f32 to vector<1x128xf32>
      %58 = arith.addf %57, %56 : vector<1x128xf32>
      %59 = arith.divf %57, %58 : vector<1x128xf32>
      %60 = vector.extract_strided_slice %53 {offsets = [0, 128], sizes = [1, 128], strides = [1, 1]} : vector<1x512xf32> to vector<1x128xf32>
      %61 = arith.negf %60 : vector<1x128xf32>
      %62 = math.exp %61 : vector<1x128xf32>
      %cst_38 = arith.constant 1.000000e+00 : f32
      %63 = vector.broadcast %cst_38 : f32 to vector<1x128xf32>
      %64 = arith.addf %63, %62 : vector<1x128xf32>
      %65 = arith.divf %63, %64 : vector<1x128xf32>
      %66 = vector.extract_strided_slice %53 {offsets = [0, 256], sizes = [1, 128], strides = [1, 1]} : vector<1x512xf32> to vector<1x128xf32>
      %67 = math.tanh %66 : vector<1x128xf32>
      %68 = vector.extract_strided_slice %53 {offsets = [0, 384], sizes = [1, 128], strides = [1, 1]} : vector<1x512xf32> to vector<1x128xf32>
      %69 = arith.negf %68 : vector<1x128xf32>
      %70 = math.exp %69 : vector<1x128xf32>
      %cst_39 = arith.constant 1.000000e+00 : f32
      %71 = vector.broadcast %cst_39 : f32 to vector<1x128xf32>
      %72 = arith.addf %71, %70 : vector<1x128xf32>
      %73 = arith.divf %71, %72 : vector<1x128xf32>
      %74 = arith.mulf %65, %arg14 : vector<1x128xf32>
      %75 = arith.mulf %59, %67 : vector<1x128xf32>
      %76 = arith.addf %74, %75 : vector<1x128xf32>
      %77 = math.tanh %76 : vector<1x128xf32>
      %78 = arith.mulf %73, %77 : vector<1x128xf32>
      %c1_i32_40 = arith.constant 1 : i32
      %79 = arith.addi %48, %c1_i32_40 : i32
      %80 = arith.index_cast %79 : i32 to index
      %c0_41 = arith.constant 0 : index
      %81 = vector.load %arg8[%80, %c0_41] : memref<16x512xf32, #tpu.memory_space<vmem>>, vector<1x512xf32>
      %cst_42 = arith.constant dense<0.000000e+00> : vector<1x512xf32>
      %82 = tpu.matmul %78, %10, %cst_42 {dimension_numbers = #tpu.dot_dimension_numbers<[1], [0], [0], [1], [0, 0, 1, 1], [], []>} : vector<1x128xf32>, vector<128x512xf32>, vector<1x512xf32> -> vector<1x512xf32>
      %83 = arith.addf %81, %82 : vector<1x512xf32>
      %84 = vector.extract_strided_slice %83 {offsets = [0, 0], sizes = [1, 128], strides = [1, 1]} : vector<1x512xf32> to vector<1x128xf32>
      %85 = arith.negf %84 : vector<1x128xf32>
      %86 = math.exp %85 : vector<1x128xf32>
      %cst_43 = arith.constant 1.000000e+00 : f32
      %87 = vector.broadcast %cst_43 : f32 to vector<1x128xf32>
      %88 = arith.addf %87, %86 : vector<1x128xf32>
      %89 = arith.divf %87, %88 : vector<1x128xf32>
      %90 = vector.extract_strided_slice %83 {offsets = [0, 128], sizes = [1, 128], strides = [1, 1]} : vector<1x512xf32> to vector<1x128xf32>
      %91 = arith.negf %90 : vector<1x128xf32>
      %92 = math.exp %91 : vector<1x128xf32>
      %cst_44 = arith.constant 1.000000e+00 : f32
      %93 = vector.broadcast %cst_44 : f32 to vector<1x128xf32>
      %94 = arith.addf %93, %92 : vector<1x128xf32>
      %95 = arith.divf %93, %94 : vector<1x128xf32>
      %96 = vector.extract_strided_slice %83 {offsets = [0, 256], sizes = [1, 128], strides = [1, 1]} : vector<1x512xf32> to vector<1x128xf32>
      %97 = math.tanh %96 : vector<1x128xf32>
      %98 = vector.extract_strided_slice %83 {offsets = [0, 384], sizes = [1, 128], strides = [1, 1]} : vector<1x512xf32> to vector<1x128xf32>
      %99 = arith.negf %98 : vector<1x128xf32>
      %100 = math.exp %99 : vector<1x128xf32>
      %cst_45 = arith.constant 1.000000e+00 : f32
      %101 = vector.broadcast %cst_45 : f32 to vector<1x128xf32>
      %102 = arith.addf %101, %100 : vector<1x128xf32>
      %103 = arith.divf %101, %102 : vector<1x128xf32>
      %104 = arith.mulf %95, %76 : vector<1x128xf32>
      %105 = arith.mulf %89, %97 : vector<1x128xf32>
      %106 = arith.addf %104, %105 : vector<1x128xf32>
      %107 = math.tanh %106 : vector<1x128xf32>
      %108 = arith.mulf %103, %107 : vector<1x128xf32>
      %c2_i32_46 = arith.constant 2 : i32
      %109 = arith.addi %48, %c2_i32_46 : i32
      %110 = arith.index_cast %109 : i32 to index
      %c0_47 = arith.constant 0 : index
      %111 = vector.load %arg8[%110, %c0_47] : memref<16x512xf32, #tpu.memory_space<vmem>>, vector<1x512xf32>
      %cst_48 = arith.constant dense<0.000000e+00> : vector<1x512xf32>
      %112 = tpu.matmul %108, %10, %cst_48 {dimension_numbers = #tpu.dot_dimension_numbers<[1], [0], [0], [1], [0, 0, 1, 1], [], []>} : vector<1x128xf32>, vector<128x512xf32>, vector<1x512xf32> -> vector<1x512xf32>
      %113 = arith.addf %111, %112 : vector<1x512xf32>
      %114 = vector.extract_strided_slice %113 {offsets = [0, 0], sizes = [1, 128], strides = [1, 1]} : vector<1x512xf32> to vector<1x128xf32>
      %115 = arith.negf %114 : vector<1x128xf32>
      %116 = math.exp %115 : vector<1x128xf32>
      %cst_49 = arith.constant 1.000000e+00 : f32
      %117 = vector.broadcast %cst_49 : f32 to vector<1x128xf32>
      %118 = arith.addf %117, %116 : vector<1x128xf32>
      %119 = arith.divf %117, %118 : vector<1x128xf32>
      %120 = vector.extract_strided_slice %113 {offsets = [0, 128], sizes = [1, 128], strides = [1, 1]} : vector<1x512xf32> to vector<1x128xf32>
      %121 = arith.negf %120 : vector<1x128xf32>
      %122 = math.exp %121 : vector<1x128xf32>
      %cst_50 = arith.constant 1.000000e+00 : f32
      %123 = vector.broadcast %cst_50 : f32 to vector<1x128xf32>
      %124 = arith.addf %123, %122 : vector<1x128xf32>
      %125 = arith.divf %123, %124 : vector<1x128xf32>
      %126 = vector.extract_strided_slice %113 {offsets = [0, 256], sizes = [1, 128], strides = [1, 1]} : vector<1x512xf32> to vector<1x128xf32>
      %127 = math.tanh %126 : vector<1x128xf32>
      %128 = vector.extract_strided_slice %113 {offsets = [0, 384], sizes = [1, 128], strides = [1, 1]} : vector<1x512xf32> to vector<1x128xf32>
      %129 = arith.negf %128 : vector<1x128xf32>
      %130 = math.exp %129 : vector<1x128xf32>
      %cst_51 = arith.constant 1.000000e+00 : f32
      %131 = vector.broadcast %cst_51 : f32 to vector<1x128xf32>
      %132 = arith.addf %131, %130 : vector<1x128xf32>
      %133 = arith.divf %131, %132 : vector<1x128xf32>
      %134 = arith.mulf %125, %106 : vector<1x128xf32>
      %135 = arith.mulf %119, %127 : vector<1x128xf32>
      %136 = arith.addf %134, %135 : vector<1x128xf32>
      %137 = math.tanh %136 : vector<1x128xf32>
      %138 = arith.mulf %133, %137 : vector<1x128xf32>
      %c3_i32 = arith.constant 3 : i32
      %139 = arith.addi %48, %c3_i32 : i32
      %140 = arith.index_cast %139 : i32 to index
      %c0_52 = arith.constant 0 : index
      %141 = vector.load %arg8[%140, %c0_52] : memref<16x512xf32, #tpu.memory_space<vmem>>, vector<1x512xf32>
      %cst_53 = arith.constant dense<0.000000e+00> : vector<1x512xf32>
      %142 = tpu.matmul %138, %10, %cst_53 {dimension_numbers = #tpu.dot_dimension_numbers<[1], [0], [0], [1], [0, 0, 1, 1], [], []>} : vector<1x128xf32>, vector<128x512xf32>, vector<1x512xf32> -> vector<1x512xf32>
      %143 = arith.addf %141, %142 : vector<1x512xf32>
      %144 = vector.extract_strided_slice %143 {offsets = [0, 0], sizes = [1, 128], strides = [1, 1]} : vector<1x512xf32> to vector<1x128xf32>
      %145 = arith.negf %144 : vector<1x128xf32>
      %146 = math.exp %145 : vector<1x128xf32>
      %cst_54 = arith.constant 1.000000e+00 : f32
      %147 = vector.broadcast %cst_54 : f32 to vector<1x128xf32>
      %148 = arith.addf %147, %146 : vector<1x128xf32>
      %149 = arith.divf %147, %148 : vector<1x128xf32>
      %150 = vector.extract_strided_slice %143 {offsets = [0, 128], sizes = [1, 128], strides = [1, 1]} : vector<1x512xf32> to vector<1x128xf32>
      %151 = arith.negf %150 : vector<1x128xf32>
      %152 = math.exp %151 : vector<1x128xf32>
      %cst_55 = arith.constant 1.000000e+00 : f32
      %153 = vector.broadcast %cst_55 : f32 to vector<1x128xf32>
      %154 = arith.addf %153, %152 : vector<1x128xf32>
      %155 = arith.divf %153, %154 : vector<1x128xf32>
      %156 = vector.extract_strided_slice %143 {offsets = [0, 256], sizes = [1, 128], strides = [1, 1]} : vector<1x512xf32> to vector<1x128xf32>
      %157 = math.tanh %156 : vector<1x128xf32>
      %158 = vector.extract_strided_slice %143 {offsets = [0, 384], sizes = [1, 128], strides = [1, 1]} : vector<1x512xf32> to vector<1x128xf32>
      %159 = arith.negf %158 : vector<1x128xf32>
      %160 = math.exp %159 : vector<1x128xf32>
      %cst_56 = arith.constant 1.000000e+00 : f32
      %161 = vector.broadcast %cst_56 : f32 to vector<1x128xf32>
      %162 = arith.addf %161, %160 : vector<1x128xf32>
      %163 = arith.divf %161, %162 : vector<1x128xf32>
      %164 = arith.mulf %155, %136 : vector<1x128xf32>
      %165 = arith.mulf %149, %157 : vector<1x128xf32>
      %166 = arith.addf %164, %165 : vector<1x128xf32>
      %167 = math.tanh %166 : vector<1x128xf32>
      %168 = arith.mulf %163, %167 : vector<1x128xf32>
      %c4_i32 = arith.constant 4 : i32
      %169 = arith.addi %48, %c4_i32 : i32
      %170 = arith.index_cast %169 : i32 to index
      %c0_57 = arith.constant 0 : index
      %171 = vector.load %arg8[%170, %c0_57] : memref<16x512xf32, #tpu.memory_space<vmem>>, vector<1x512xf32>
      %cst_58 = arith.constant dense<0.000000e+00> : vector<1x512xf32>
      %172 = tpu.matmul %168, %10, %cst_58 {dimension_numbers = #tpu.dot_dimension_numbers<[1], [0], [0], [1], [0, 0, 1, 1], [], []>} : vector<1x128xf32>, vector<128x512xf32>, vector<1x512xf32> -> vector<1x512xf32>
      %173 = arith.addf %171, %172 : vector<1x512xf32>
      %174 = vector.extract_strided_slice %173 {offsets = [0, 0], sizes = [1, 128], strides = [1, 1]} : vector<1x512xf32> to vector<1x128xf32>
      %175 = arith.negf %174 : vector<1x128xf32>
      %176 = math.exp %175 : vector<1x128xf32>
      %cst_59 = arith.constant 1.000000e+00 : f32
      %177 = vector.broadcast %cst_59 : f32 to vector<1x128xf32>
      %178 = arith.addf %177, %176 : vector<1x128xf32>
      %179 = arith.divf %177, %178 : vector<1x128xf32>
      %180 = vector.extract_strided_slice %173 {offsets = [0, 128], sizes = [1, 128], strides = [1, 1]} : vector<1x512xf32> to vector<1x128xf32>
      %181 = arith.negf %180 : vector<1x128xf32>
      %182 = math.exp %181 : vector<1x128xf32>
      %cst_60 = arith.constant 1.000000e+00 : f32
      %183 = vector.broadcast %cst_60 : f32 to vector<1x128xf32>
      %184 = arith.addf %183, %182 : vector<1x128xf32>
      %185 = arith.divf %183, %184 : vector<1x128xf32>
      %186 = vector.extract_strided_slice %173 {offsets = [0, 256], sizes = [1, 128], strides = [1, 1]} : vector<1x512xf32> to vector<1x128xf32>
      %187 = math.tanh %186 : vector<1x128xf32>
      %188 = vector.extract_strided_slice %173 {offsets = [0, 384], sizes = [1, 128], strides = [1, 1]} : vector<1x512xf32> to vector<1x128xf32>
      %189 = arith.negf %188 : vector<1x128xf32>
      %190 = math.exp %189 : vector<1x128xf32>
      %cst_61 = arith.constant 1.000000e+00 : f32
      %191 = vector.broadcast %cst_61 : f32 to vector<1x128xf32>
      %192 = arith.addf %191, %190 : vector<1x128xf32>
      %193 = arith.divf %191, %192 : vector<1x128xf32>
      %194 = arith.mulf %185, %166 : vector<1x128xf32>
      %195 = arith.mulf %179, %187 : vector<1x128xf32>
      %196 = arith.addf %194, %195 : vector<1x128xf32>
      %197 = math.tanh %196 : vector<1x128xf32>
      %198 = arith.mulf %193, %197 : vector<1x128xf32>
      %c5_i32 = arith.constant 5 : i32
      %199 = arith.addi %48, %c5_i32 : i32
      %200 = arith.index_cast %199 : i32 to index
      %c0_62 = arith.constant 0 : index
      %201 = vector.load %arg8[%200, %c0_62] : memref<16x512xf32, #tpu.memory_space<vmem>>, vector<1x512xf32>
      %cst_63 = arith.constant dense<0.000000e+00> : vector<1x512xf32>
      %202 = tpu.matmul %198, %10, %cst_63 {dimension_numbers = #tpu.dot_dimension_numbers<[1], [0], [0], [1], [0, 0, 1, 1], [], []>} : vector<1x128xf32>, vector<128x512xf32>, vector<1x512xf32> -> vector<1x512xf32>
      %203 = arith.addf %201, %202 : vector<1x512xf32>
      %204 = vector.extract_strided_slice %203 {offsets = [0, 0], sizes = [1, 128], strides = [1, 1]} : vector<1x512xf32> to vector<1x128xf32>
      %205 = arith.negf %204 : vector<1x128xf32>
      %206 = math.exp %205 : vector<1x128xf32>
      %cst_64 = arith.constant 1.000000e+00 : f32
      %207 = vector.broadcast %cst_64 : f32 to vector<1x128xf32>
      %208 = arith.addf %207, %206 : vector<1x128xf32>
      %209 = arith.divf %207, %208 : vector<1x128xf32>
      %210 = vector.extract_strided_slice %203 {offsets = [0, 128], sizes = [1, 128], strides = [1, 1]} : vector<1x512xf32> to vector<1x128xf32>
      %211 = arith.negf %210 : vector<1x128xf32>
      %212 = math.exp %211 : vector<1x128xf32>
      %cst_65 = arith.constant 1.000000e+00 : f32
      %213 = vector.broadcast %cst_65 : f32 to vector<1x128xf32>
      %214 = arith.addf %213, %212 : vector<1x128xf32>
      %215 = arith.divf %213, %214 : vector<1x128xf32>
      %216 = vector.extract_strided_slice %203 {offsets = [0, 256], sizes = [1, 128], strides = [1, 1]} : vector<1x512xf32> to vector<1x128xf32>
      %217 = math.tanh %216 : vector<1x128xf32>
      %218 = vector.extract_strided_slice %203 {offsets = [0, 384], sizes = [1, 128], strides = [1, 1]} : vector<1x512xf32> to vector<1x128xf32>
      %219 = arith.negf %218 : vector<1x128xf32>
      %220 = math.exp %219 : vector<1x128xf32>
      %cst_66 = arith.constant 1.000000e+00 : f32
      %221 = vector.broadcast %cst_66 : f32 to vector<1x128xf32>
      %222 = arith.addf %221, %220 : vector<1x128xf32>
      %223 = arith.divf %221, %222 : vector<1x128xf32>
      %224 = arith.mulf %215, %196 : vector<1x128xf32>
      %225 = arith.mulf %209, %217 : vector<1x128xf32>
      %226 = arith.addf %224, %225 : vector<1x128xf32>
      %227 = math.tanh %226 : vector<1x128xf32>
      %228 = arith.mulf %223, %227 : vector<1x128xf32>
      %c6_i32 = arith.constant 6 : i32
      %229 = arith.addi %48, %c6_i32 : i32
      %230 = arith.index_cast %229 : i32 to index
      %c0_67 = arith.constant 0 : index
      %231 = vector.load %arg8[%230, %c0_67] : memref<16x512xf32, #tpu.memory_space<vmem>>, vector<1x512xf32>
      %cst_68 = arith.constant dense<0.000000e+00> : vector<1x512xf32>
      %232 = tpu.matmul %228, %10, %cst_68 {dimension_numbers = #tpu.dot_dimension_numbers<[1], [0], [0], [1], [0, 0, 1, 1], [], []>} : vector<1x128xf32>, vector<128x512xf32>, vector<1x512xf32> -> vector<1x512xf32>
      %233 = arith.addf %231, %232 : vector<1x512xf32>
      %234 = vector.extract_strided_slice %233 {offsets = [0, 0], sizes = [1, 128], strides = [1, 1]} : vector<1x512xf32> to vector<1x128xf32>
      %235 = arith.negf %234 : vector<1x128xf32>
      %236 = math.exp %235 : vector<1x128xf32>
      %cst_69 = arith.constant 1.000000e+00 : f32
      %237 = vector.broadcast %cst_69 : f32 to vector<1x128xf32>
      %238 = arith.addf %237, %236 : vector<1x128xf32>
      %239 = arith.divf %237, %238 : vector<1x128xf32>
      %240 = vector.extract_strided_slice %233 {offsets = [0, 128], sizes = [1, 128], strides = [1, 1]} : vector<1x512xf32> to vector<1x128xf32>
      %241 = arith.negf %240 : vector<1x128xf32>
      %242 = math.exp %241 : vector<1x128xf32>
      %cst_70 = arith.constant 1.000000e+00 : f32
      %243 = vector.broadcast %cst_70 : f32 to vector<1x128xf32>
      %244 = arith.addf %243, %242 : vector<1x128xf32>
      %245 = arith.divf %243, %244 : vector<1x128xf32>
      %246 = vector.extract_strided_slice %233 {offsets = [0, 256], sizes = [1, 128], strides = [1, 1]} : vector<1x512xf32> to vector<1x128xf32>
      %247 = math.tanh %246 : vector<1x128xf32>
      %248 = vector.extract_strided_slice %233 {offsets = [0, 384], sizes = [1, 128], strides = [1, 1]} : vector<1x512xf32> to vector<1x128xf32>
      %249 = arith.negf %248 : vector<1x128xf32>
      %250 = math.exp %249 : vector<1x128xf32>
      %cst_71 = arith.constant 1.000000e+00 : f32
      %251 = vector.broadcast %cst_71 : f32 to vector<1x128xf32>
      %252 = arith.addf %251, %250 : vector<1x128xf32>
      %253 = arith.divf %251, %252 : vector<1x128xf32>
      %254 = arith.mulf %245, %226 : vector<1x128xf32>
      %255 = arith.mulf %239, %247 : vector<1x128xf32>
      %256 = arith.addf %254, %255 : vector<1x128xf32>
      %257 = math.tanh %256 : vector<1x128xf32>
      %258 = arith.mulf %253, %257 : vector<1x128xf32>
      %c7_i32 = arith.constant 7 : i32
      %259 = arith.addi %48, %c7_i32 : i32
      %260 = arith.index_cast %259 : i32 to index
      %c0_72 = arith.constant 0 : index
      %261 = vector.load %arg8[%260, %c0_72] : memref<16x512xf32, #tpu.memory_space<vmem>>, vector<1x512xf32>
      %cst_73 = arith.constant dense<0.000000e+00> : vector<1x512xf32>
      %262 = tpu.matmul %258, %10, %cst_73 {dimension_numbers = #tpu.dot_dimension_numbers<[1], [0], [0], [1], [0, 0, 1, 1], [], []>} : vector<1x128xf32>, vector<128x512xf32>, vector<1x512xf32> -> vector<1x512xf32>
      %263 = arith.addf %261, %262 : vector<1x512xf32>
      %264 = vector.extract_strided_slice %263 {offsets = [0, 0], sizes = [1, 128], strides = [1, 1]} : vector<1x512xf32> to vector<1x128xf32>
      %265 = arith.negf %264 : vector<1x128xf32>
      %266 = math.exp %265 : vector<1x128xf32>
      %cst_74 = arith.constant 1.000000e+00 : f32
      %267 = vector.broadcast %cst_74 : f32 to vector<1x128xf32>
      %268 = arith.addf %267, %266 : vector<1x128xf32>
      %269 = arith.divf %267, %268 : vector<1x128xf32>
      %270 = vector.extract_strided_slice %263 {offsets = [0, 128], sizes = [1, 128], strides = [1, 1]} : vector<1x512xf32> to vector<1x128xf32>
      %271 = arith.negf %270 : vector<1x128xf32>
      %272 = math.exp %271 : vector<1x128xf32>
      %cst_75 = arith.constant 1.000000e+00 : f32
      %273 = vector.broadcast %cst_75 : f32 to vector<1x128xf32>
      %274 = arith.addf %273, %272 : vector<1x128xf32>
      %275 = arith.divf %273, %274 : vector<1x128xf32>
      %276 = vector.extract_strided_slice %263 {offsets = [0, 256], sizes = [1, 128], strides = [1, 1]} : vector<1x512xf32> to vector<1x128xf32>
      %277 = math.tanh %276 : vector<1x128xf32>
      %278 = vector.extract_strided_slice %263 {offsets = [0, 384], sizes = [1, 128], strides = [1, 1]} : vector<1x512xf32> to vector<1x128xf32>
      %279 = arith.negf %278 : vector<1x128xf32>
      %280 = math.exp %279 : vector<1x128xf32>
      %cst_76 = arith.constant 1.000000e+00 : f32
      %281 = vector.broadcast %cst_76 : f32 to vector<1x128xf32>
      %282 = arith.addf %281, %280 : vector<1x128xf32>
      %283 = arith.divf %281, %282 : vector<1x128xf32>
      %284 = arith.mulf %275, %256 : vector<1x128xf32>
      %285 = arith.mulf %269, %277 : vector<1x128xf32>
      %286 = arith.addf %284, %285 : vector<1x128xf32>
      %287 = math.tanh %286 : vector<1x128xf32>
      %288 = arith.mulf %283, %287 : vector<1x128xf32>
      %289 = tpu.concatenate %78, %108, %138, %168, %198, %228, %258, %288 in 0 : vector<1x128xf32>, vector<1x128xf32>, vector<1x128xf32>, vector<1x128xf32>, vector<1x128xf32>, vector<1x128xf32>, vector<1x128xf32>, vector<1x128xf32> -> vector<8x128xf32>
      %290 = arith.index_cast %48 : i32 to index
      %c0_77 = arith.constant 0 : index
      %291 = vector.load %arg9[%290, %c0_77] : memref<16x128xf32, #tpu.memory_space<vmem>>, vector<8x128xf32>
      tpu.vector_store %arg9[%290, %c0_77], %289 {strides = array<i32>} : memref<16x128xf32, #tpu.memory_space<vmem>>, vector<8x128xf32>,
      scf.yield %288, %286 : vector<1x128xf32>, vector<1x128xf32>
    }
    %c2_i32_15 = arith.constant 2 : i32
    %c0_16 = arith.constant 0 : index
    %c0_17 = arith.constant 0 : index
    %15 = vector.load %arg10[%c0_16, %c0_17] : memref<1x128xf32, #tpu.memory_space<vmem>>, vector<1x128xf32>
    tpu.vector_store %arg10[%c0_16, %c0_17], %14#0 {strides = array<i32>} : memref<1x128xf32, #tpu.memory_space<vmem>>, vector<1x128xf32>,
    %c0_18 = arith.constant 0 : index
    %c0_19 = arith.constant 0 : index
    %16 = vector.load %arg11[%c0_18, %c0_19] : memref<1x128xf32, #tpu.memory_space<vmem>>, vector<1x128xf32>
    tpu.vector_store %arg11[%c0_18, %c0_19], %14#1 {strides = array<i32>} : memref<1x128xf32, #tpu.memory_space<vmem>>, vector<1x128xf32>,
    %c0_20 = arith.constant 0 : index
    %c0_21 = arith.constant 0 : index
    %17 = vector.load %arg9[%c0_20, %c0_21] : memref<16x128xf32, #tpu.memory_space<vmem>>, vector<16x128xf32>
    %18 = tpu.iota {dimensions = array<i32: 1>} : vector<16x128xi32>
    %c16_i32 = arith.constant 16 : i32
    %19 = vector.broadcast %c16_i32 : i32 to vector<16x128xi32>
    %20 = arith.cmpi slt, %18, %19 : vector<16x128xi32>
    %cst_22 = arith.constant dense<0.000000e+00> : vector<16xf32>
    %21 = vector.multi_reduction <add>, %17, %cst_22 [1] : vector<16x128xf32> to vector<16xf32>
    %22 = vector.shape_cast %21 : vector<16xf32> to vector<16x1xf32>
    %cst_23 = arith.constant 6.250000e-02 : f32
    %23 = vector.broadcast %cst_23 : f32 to vector<16x1xf32>
    %24 = arith.mulf %22, %23 : vector<16x1xf32>
    %25 = vector.broadcast %24 : vector<16x1xf32> to vector<16x128xf32>
    %26 = arith.subf %17, %25 : vector<16x128xf32>
    %cst_24 = arith.constant 0.000000e+00 : f32
    %27 = vector.broadcast %cst_24 : f32 to vector<16x128xf32>
    %28 = arith.select %20, %26, %27 : vector<16x128xi1>, vector<16x128xf32>
    %29 = arith.mulf %28, %28 : vector<16x128xf32>
    %cst_25 = arith.constant dense<0.000000e+00> : vector<16xf32>
    %30 = vector.multi_reduction <add>, %29, %cst_25 [1] : vector<16x128xf32> to vector<16xf32>
    %31 = vector.shape_cast %30 : vector<16xf32> to vector<16x1xf32>
    %cst_26 = arith.constant 6.250000e-02 : f32
    %32 = vector.broadcast %cst_26 : f32 to vector<16x1xf32>
    %33 = arith.mulf %31, %32 : vector<16x1xf32>
    %cst_27 = arith.constant 9.99999974E-6 : f32
    %34 = vector.broadcast %cst_27 : f32 to vector<16x1xf32>
    %35 = arith.addf %33, %34 : vector<16x1xf32>
    %36 = math.rsqrt %35 : vector<16x1xf32>
    %37 = vector.broadcast %36 : vector<16x1xf32> to vector<16x128xf32>
    %38 = arith.mulf %26, %37 : vector<16x128xf32>
    %c0_28 = arith.constant 0 : index
    %c0_29 = arith.constant 0 : index
    %39 = vector.load %arg5[%c0_28, %c0_29] : memref<1x128xf32, #tpu.memory_space<vmem>>, vector<1x128xf32>
    %40 = vector.broadcast %39 : vector<1x128xf32> to vector<16x128xf32>
    %41 = arith.mulf %38, %40 : vector<16x128xf32>
    %c0_30 = arith.constant 0 : index
    %c0_31 = arith.constant 0 : index
    %42 = vector.load %arg6[%c0_30, %c0_31] : memref<1x128xf32, #tpu.memory_space<vmem>>, vector<1x128xf32>
    %43 = vector.broadcast %42 : vector<1x128xf32> to vector<16x128xf32>
    %44 = arith.addf %41, %43 : vector<16x128xf32>
    %45 = vector.extract_strided_slice %44 {offsets = [0, 0], sizes = [16, 8], strides = [1, 1]} : vector<16x128xf32> to vector<16x8xf32>
    %c0_32 = arith.constant 0 : index
    %c0_33 = arith.constant 0 : index
    %46 = vector.load %arg7[%c0_32, %c0_33] : memref<16x8xf32, #tpu.memory_space<vmem>>, vector<16x8xf32>
    tpu.vector_store %arg7[%c0_32, %c0_33], %45 {strides = array<i32>} : memref<16x8xf32, #tpu.memory_space<vmem>>, vector<16x8xf32>,
    return
  }
  func.func @transform_0(%arg0: i32) -> (i32, i32) {
    %c0_i32 = arith.constant 0 : i32
    %c0_i32_0 = arith.constant 0 : i32
    return %arg0, %c0_i32 : i32, i32
  }
  func.func @transform_1(%arg0: i32) -> (i32, i32) {
    %c0_i32 = arith.constant 0 : i32
    %c0_i32_0 = arith.constant 0 : i32
    %c0_i32_1 = arith.constant 0 : i32
    return %c0_i32, %c0_i32_0 : i32, i32
  }
  func.func @transform_2(%arg0: i32) -> (i32, i32) {
    %c0_i32 = arith.constant 0 : i32
    %c0_i32_0 = arith.constant 0 : i32
    %c0_i32_1 = arith.constant 0 : i32
    return %c0_i32, %c0_i32_0 : i32, i32
  }
  func.func @transform_3(%arg0: i32) -> (i32, i32) {
    %c0_i32 = arith.constant 0 : i32
    %c0_i32_0 = arith.constant 0 : i32
    %c0_i32_1 = arith.constant 0 : i32
    return %c0_i32, %c0_i32_0 : i32, i32
  }
  func.func @transform_4(%arg0: i32) -> (i32, i32) {
    %c0_i32 = arith.constant 0 : i32
    %c0_i32_0 = arith.constant 0 : i32
    %c0_i32_1 = arith.constant 0 : i32
    return %c0_i32, %c0_i32_0 : i32, i32
  }
  func.func @transform_5(%arg0: i32) -> (i32, i32) {
    %c0_i32 = arith.constant 0 : i32
    %c0_i32_0 = arith.constant 0 : i32
    %c0_i32_1 = arith.constant 0 : i32
    return %c0_i32, %c0_i32_0 : i32, i32
  }
  func.func @transform_6(%arg0: i32) -> (i32, i32) {
    %c0_i32 = arith.constant 0 : i32
    %c0_i32_0 = arith.constant 0 : i32
    return %arg0, %c0_i32 : i32, i32
  }
}

</mosaic_0001>

<bundles_post_ra>
// kernel: btmf_forward.3
= control target key start
LH: loop header
LB: loop body
LE: loop exit
PB: predicated region body
PF: predicated region fallthrough
CT: control target
= control target key end

     0   :  { %vm15_vm0 = vcmask 64512   ;;  %s191_s0 = inlined_call_operand.vmem [shape: f32[16,8], index: 0, kind: input, shape index: {}]   ;;  %s192_s1 = inlined_call_operand.vmem [shape: f32[8,128], index: 1, kind: input, shape index: {}]   ;;  %s193_s2 = inlined_call_operand.hbm [shape: f32[16,128], index: 2, kind: output, shape index: {}]  }
   0x1   :  { %v14_v0 = vld [vmem:[%s192_s1] sm:$0xff]  ;;  %v13_v2 = vld [vmem:[%s191_s0 + $0x8] sm:$0xff] }
   0x2   :  { %v12_v1 = vld [vmem:[%s191_s0] sm:$0xff]  ;;  %120 = vmatprep.subr.mxu0 %v14_v0 }
   0x3   :  { %122 = vmatprep.mubr.msk.f32.mxu0 %vm15_vm0, %v12_v1 }
   0x4   :  { %7 = vsyncpa [#allocation3], 0  ;;  %121 = vmatpush3.msra.mxu0 %v14_v0  ;;  %s152_s15 = smov [#allocation2]  }
   0x5   :  { %123 = vmatmul.mubr.msk.f32.vlgmr.msra.gmra.mrb[0].mxu0 %vm15_vm0, %v13_v2  ;;  %s104_s16 = sshll.u32 %s152_s15, 4  ;;  %s105_s16 = int_to_ptr.vmem [resolvable:$true] %s104_s16 }
   0x6   :  { %s128_s1 = scalar_lea.vmem %s105_s16, 256  ;;  %p133_p1 = scmp.lt.s32.totalorder %s105_s16, %s105_s16 }
   0x7   :  { %p129_p0 = scmp.ne.s32.totalorder %s105_s16, %s128_s1  ;;  %p134_p2 = scmp.lt.s32.totalorder %s128_s1, %s128_s1 }
   0x9   :  { %p135_p3 = por %p134_p2, %p133_p1 }
   0xb   :  { %p136_p4 = pnand %p135_p3, %p129_p0 }
  0xd8   :  { %v124_v3 = vpop.f32.mrb[0].mxu0 }
  0xd9   :  { %98 = vst [vmem:[#allocation2 + $0x8] sm:$0xff] %v124_v3  ;;  %v88_v4 = vpop.f32.mrb[1].mxu0 }
  0xda   :  { %97 = vst [vmem:[#allocation2] sm:$0xff] %v88_v4 }
  0xdb   :  { %139 = shalt.err (!%p136_p4)
}
  0xdc   :  { %s140_s18 = scalar_lea.hbm %s193_s2, 256 }
  0xdd   :  { %p141_p5 = scmp.ne.s32.totalorder %s193_s2, %s140_s18  ;;  %p144_p6 = scmp.lt.u32.totalorder %s140_s18, %s193_s2 }
  0xdf   :  { %p146_p7 = pnand %p144_p6, %p141_p5 }
  0xe1   :  { %149 = shalt.err (!%p146_p7)
}
  0xe2   :  { %s153_s23 = smov 128   ;;  %s154_s24 = smov 8  }
  0xe3   :  { %110 = dma.vmem_to_hbm [thread:$0]  %s105_s16, 256, %s193_s2, [#allocation3], %s153_s23, %s153_s23, %s154_s24  }
  0xe4   :  { %150 = dma.done.wait [#allocation3], 256  }
  0xe5   :  { %151 = vsyncadd [#allocation3], 4294967040 }
  0xe6   :  { %114 = vsyncpa [#allocation3], 1 }

// kernel: btmf_forward.2
= control target key start
LH: loop header
LB: loop body
LE: loop exit
PB: predicated region body
PF: predicated region fallthrough
CT: control target
= control target key end

     0   :  { %vm68_vm0 = vcmask 1043456   ;;  %vm2934_vm1 = vmmov 1   ;;  %v2935_v3 = vmov 0.0   ;;  %vm61_vm3 = vcmask 97280   ;;  %s3886_s1 = inlined_call_operand.vmem [shape: f32[12,512], index: 1, kind: input, shape index: {}]   ;;  %s3887_s4 = inlined_call_operand.vmem [shape: f32[1,128], index: 4, kind: input, shape index: {}]   ;;  %s3888_s5 = inlined_call_operand.vmem [shape: f32[1,128], index: 5, kind: input, shape index: {}]   ;;  %s3889_s6 = inlined_call_operand.vmem [shape: f32[16,8], index: 6, kind: output, shape index: {}]   ;;  %s3890_s0 = inlined_call_operand.vmem [shape: f32[16,12], index: 0, kind: input, shape index: {}]   ;;  %s3891_s2 = inlined_call_operand.vmem [shape: f32[128,512], index: 2, kind: input, shape index: {}]   ;;  %s3892_s3 = inlined_call_operand.vmem [shape: f32[1,512], index: 3, kind: input, shape index: {}]  }
   0x1   :  { %v32_v0 = vld [vmem:[%s3886_s1 + $0x8] sm:$0xff]  ;;  %vm2980_vm2 = vmpackc.low %vm68_vm0, %vm2934_vm1  ;;  %27 = vst [vmem:[#allocation4] sm:$0x1] %v2935_v3  ;;  %145 = vmatprep.mubr.f32.mxu0 %v2935_v3  ;;  %222 = vmatprep.mubr.f32.mxu1 %v2935_v3  ;;  %v34_v5 = vld [vmem:[%s3886_s1 + $0x18] sm:$0xff] }
   0x2   :  { %v36_v1 = vld [vmem:[%s3886_s1 + $0x28] sm:$0xf]  ;;  %28 = vst [vmem:[#allocation5] sm:$0x1] %v2935_v3  ;;  %v38_v6 = vld [vmem:[%s3886_s1 + $0x38] sm:$0xf] }
   0x3   :  { %v2226_v4 = vpack.c.bf16 %v36_v1, %v32_v0  ;;  %v31_v7 = vld [vmem:[%s3886_s1] sm:$0xff]  ;;  %v2232_v8 = vpack.c.bf16 %v38_v6, %v34_v5  ;;  %v33_v10 = vld [vmem:[%s3886_s1 + $0x10] sm:$0xff]  ;;  %v30_v17 = vld [vmem:[%s3890_s0 + $0x8] sm:$0xff] }
   0x4   :  { %v35_v9 = vld [vmem:[%s3886_s1 + $0x20] sm:$0xf]  ;;  %v37_v11 = vld [vmem:[%s3886_s1 + $0x30] sm:$0xf]  ;;  %v3028_v19 = vld [vmem:[%s3891_s2 + $0x8] sm:$0xff] }
   0x5   :  { %2228 = vmatprep.subr.msk.bf16.mxu0 %vm2980_vm2, %v2226_v4  ;;  %v2229_v12 = vpack.c.bf16 %v35_v9, %v31_v7  ;;  %v2235_v13 = vpack.c.bf16 %v37_v11, %v33_v10  ;;  %2234 = vmatprep.subr.msk.bf16.mxu1 %vm2980_vm2, %v2232_v8  ;;  %v29_v14 = vld [vmem:[%s3890_s0] sm:$0xff]  ;;  %3902 = vst [vmem:[#allocation7_spill] sm:$0xff] %v3028_v19  ;;  %v3033_v20 = vld [vmem:[%s3891_s2 + $0x10] sm:$0xff]  ;;  %v3038_v21 = vld [vmem:[%s3891_s2 + $0x18] sm:$0xff] }
   0x6   :  { %v3023_v18 = vld [vmem:[%s3891_s2] sm:$0xff]  ;;  %3903 = vst [vmem:[#allocation8_spill] sm:$0xff] %v3033_v20  ;;  %3904 = vst [vmem:[#allocation9_spill] sm:$0xff] %v3038_v21  ;;  %v3048_v23 = vld [vmem:[%s3891_s2 + $0x28] sm:$0xff] }
   0x7   :  { %2231 = vmatpush1.bf16.msk.msra.mxu0 %vm2980_vm2, %v2229_v12  ;;  %2237 = vmatpush1.bf16.msk.msra.mxu1 %vm2980_vm2, %v2235_v13  ;;  %3901 = vst [vmem:[#allocation6_spill] sm:$0xff] %v3023_v18  ;;  %v3043_v22 = vld [vmem:[%s3891_s2 + $0x20] sm:$0xff]  ;;  %3906 = vst [vmem:[#allocation11_spill] sm:$0xff] %v3048_v23  ;;  %v3053_v24 = vld [vmem:[%s3891_s2 + $0x30] sm:$0xff] }
   0x8   :  { %v3013_v15 = vld [vmem:[#allocation4] sm:$0x1]   ;;  %3905 = vst [vmem:[#allocation10_spill] sm:$0xff] %v3043_v22  ;;  %3907 = vst [vmem:[#allocation12_spill] sm:$0xff] %v3053_v24  ;;  %v3058_v25 = vld [vmem:[%s3891_s2 + $0x38] sm:$0xff] }
   0x9   :  { %v3015_v16 = vld [vmem:[#allocation5] sm:$0x1]   ;;  %3908 = vst [vmem:[#allocation13_spill] sm:$0xff] %v3058_v25  ;;  %v3063_v26 = vld [vmem:[%s3891_s2 + $0x40] sm:$0xff]  ;;  %v3068_v27 = vld [vmem:[%s3891_s2 + $0x48] sm:$0xff] }
   0xa   :  { %2169 = vmatmul.mubr.msk.f32.vlgmr.msra.gmra.mrb[0].mxu0 %vm61_vm3, %v29_v14  ;;  %2173 = vmatmul.mubr.msk.f32.vlgmr.msra.gmra.mrb[0].mxu1 %vm61_vm3, %v29_v14  ;;  %3909 = vst [vmem:[#allocation14_spill] sm:$0xff] %v3063_v26  ;;  %3910 = vst [vmem:[#allocation15_spill] sm:$0xff] %v3068_v27  ;;  %v3073_v28 = vld [vmem:[%s3891_s2 + $0x50] sm:$0xff]  ;;  %v3078_v29 = vld [vmem:[%s3891_s2 + $0x58] sm:$0xff] }
   0xb   :  { %151 = vmatprep.mubr.f32.mxu0 %v2935_v3  ;;  %228 = vmatprep.mubr.f32.mxu1 %v2935_v3  ;;  %3911 = vst [vmem:[#allocation16_spill] sm:$0xff] %v3073_v28  ;;  %3912 = vst [vmem:[#allocation17_spill] sm:$0xff] %v3078_v29  ;;  %v3083_v30 = vld [vmem:[%s3891_s2 + $0x60] sm:$0xff]  ;;  %v3088_v31 = vld [vmem:[%s3891_s2 + $0x68] sm:$0xff] }
   0xc   :  { %3913 = vst [vmem:[#allocation18_spill] sm:$0xff] %v3083_v30  ;;  %3914 = vst [vmem:[#allocation19_spill] sm:$0xff] %v3088_v31  ;;  %v3093_v32 = vld [vmem:[%s3891_s2 + $0x70] sm:$0xff]  ;;  %v3098_v33 = vld [vmem:[%s3891_s2 + $0x78] sm:$0xff] }
   0xd   :  { %3915 = vst [vmem:[#allocation20_spill] sm:$0xff] %v3093_v32  ;;  %3916 = vst [vmem:[#allocation21_spill] sm:$0xff] %v3098_v33  ;;  %v3103_v34 = vld [vmem:[%s3891_s2 + $0x80] sm:$0xff]  ;;  %v3108_v35 = vld [vmem:[%s3891_s2 + $0x88] sm:$0xff] }
   0xe   :  { %2170 = vmatmul.mubr.msk.f32.gmra.mrb[2].mxu0 %vm61_vm3, %v30_v17  ;;  %2174 = vmatmul.mubr.msk.f32.gmra.mrb[2].mxu1 %vm61_vm3, %v30_v17  ;;  %3917 = vst [vmem:[#allocation22_spill] sm:$0xff] %v3103_v34  ;;  %3918 = vst [vmem:[#allocation23_spill] sm:$0xff] %v3108_v35  ;;  %v3113_v36 = vld [vmem:[%s3891_s2 + $0x90] sm:$0xff]  ;;  %v3118_v37 = vld [vmem:[%s3891_s2 + $0x98] sm:$0xff] }
   0xf   :  { %3919 = vst [vmem:[#allocation24_spill] sm:$0xff] %v3113_v36  ;;  %3920 = vst [vmem:[#allocation25_spill] sm:$0xff] %v3118_v37  ;;  %v3123_v38 = vld [vmem:[%s3891_s2 + $0xa0] sm:$0xff]  ;;  %v3128_v39 = vld [vmem:[%s3891_s2 + $0xa8] sm:$0xff] }
  0x10   :  { %3921 = vst [vmem:[#allocation26_spill] sm:$0xff] %v3123_v38  ;;  %3922 = vst [vmem:[#allocation27_spill] sm:$0xff] %v3128_v39  ;;  %v3133_v40 = vld [vmem:[%s3891_s2 + $0xb0] sm:$0xff]  ;;  %v3138_v41 = vld [vmem:[%s3891_s2 + $0xb8] sm:$0xff] }
  0x11   :  { %3923 = vst [vmem:[#allocation28_spill] sm:$0xff] %v3133_v40  ;;  %3924 = vst [vmem:[#allocation29_spill] sm:$0xff] %v3138_v41  ;;  %v3143_v42 = vld [vmem:[%s3891_s2 + $0xc0] sm:$0xff]  ;;  %v3148_v43 = vld [vmem:[%s3891_s2 + $0xc8] sm:$0xff] }
  0x12   :  { %3925 = vst [vmem:[#allocation30_spill] sm:$0xff] %v3143_v42  ;;  %3926 = vst [vmem:[#allocation31_spill] sm:$0xff] %v3148_v43  ;;  %v3153_v44 = vld [vmem:[%s3891_s2 + $0xd0] sm:$0xff]  ;;  %v3158_v45 = vld [vmem:[%s3891_s2 + $0xd8] sm:$0xff] }
  0x13   :  { %3927 = vst [vmem:[#allocation32_spill] sm:$0xff] %v3153_v44  ;;  %3928 = vst [vmem:[#allocation33_spill] sm:$0xff] %v3158_v45  ;;  %v3163_v46 = vld [vmem:[%s3891_s2 + $0xe0] sm:$0xff]  ;;  %v3168_v47 = vld [vmem:[%s3891_s2 + $0xe8] sm:$0xff] }
  0x14   :  { %3929 = vst [vmem:[#allocation34_spill] sm:$0xff] %v3163_v46  ;;  %3930 = vst [vmem:[#allocation35_spill] sm:$0xff] %v3168_v47  ;;  %v3173_v48 = vld [vmem:[%s3891_s2 + $0xf0] sm:$0xff]  ;;  %v3178_v49 = vld [vmem:[%s3891_s2 + $0xf8] sm:$0xff] }
  0x15   :  { %3931 = vst [vmem:[#allocation36_spill] sm:$0xff] %v3173_v48  ;;  %3932 = vst [vmem:[#allocation37_spill] sm:$0xff] %v3178_v49  ;;  %v3183_v50 = vld [vmem:[%s3891_s2 + $0x100] sm:$0xff]  ;;  %v3188_v51 = vld [vmem:[%s3891_s2 + $0x108] sm:$0xff] }
  0x16   :  { %v3193_v52 = vld [vmem:[%s3891_s2 + $0x110] sm:$0xff]  ;;  %v3198_v53 = vld [vmem:[%s3891_s2 + $0x118] sm:$0xff]  ;;  %v3203_v54 = vld [vmem:[%s3891_s2 + $0x120] sm:$0xff] }
  0x17   :  { %v3208_v55 = vld [vmem:[%s3891_s2 + $0x128] sm:$0xff]  ;;  %v3213_v56 = vld [vmem:[%s3891_s2 + $0x130] sm:$0xff]  ;;  %v3218_v57 = vld [vmem:[%s3891_s2 + $0x138] sm:$0xff] }
  0x18   :  { %v3223_v58 = vld [vmem:[%s3891_s2 + $0x140] sm:$0xff]  ;;  %v3228_v59 = vld [vmem:[%s3891_s2 + $0x148] sm:$0xff]  ;;  %v3233_v60 = vld [vmem:[%s3891_s2 + $0x150] sm:$0xff] }
  0x19   :  { %3933 = vst [vmem:[#allocation38_spill] sm:$0xff] %v3223_v58  ;;  %3934 = vst [vmem:[#allocation39_spill] sm:$0xff] %v3233_v60  ;;  %v3238_v61 = vld [vmem:[%s3891_s2 + $0x158] sm:$0xff]  ;;  %v3243_v62 = vld [vmem:[%s3891_s2 + $0x160] sm:$0xff] }
  0x1a   :  { %3935 = vst [vmem:[#allocation40_spill] sm:$0xff] %v3238_v61  ;;  %3936 = vst [vmem:[#allocation41_spill] sm:$0xff] %v3243_v62  ;;  %v3248_v63 = vld [vmem:[%s3891_s2 + $0x168] sm:$0xff]  ;;  %v3253_v0 = vld [vmem:[%s3891_s2 + $0x170] sm:$0xff] }
  0x1b   :  { %3937 = vst [vmem:[#allocation42_spill] sm:$0xff] %v3248_v63  ;;  %3938 = vst [vmem:[#allocation43_spill] sm:$0xff] %v3253_v0  ;;  %v3258_v1 = vld [vmem:[%s3891_s2 + $0x178] sm:$0xff]  ;;  %v3263_v2 = vld [vmem:[%s3891_s2 + $0x180] sm:$0xff] }
  0x1c   :  { %3939 = vst [vmem:[#allocation44_spill] sm:$0xff] %v3258_v1  ;;  %3940 = vst [vmem:[#allocation45_spill] sm:$0xff] %v3263_v2  ;;  %v3268_v3 = vld [vmem:[%s3891_s2 + $0x188] sm:$0xff]  ;;  %v3273_v4 = vld [vmem:[%s3891_s2 + $0x190] sm:$0xff] }
  0x1d   :  { %3941 = vst [vmem:[#allocation46_spill] sm:$0xff] %v3268_v3  ;;  %3942 = vst [vmem:[#allocation47_spill] sm:$0xff] %v3273_v4  ;;  %v3278_v5 = vld [vmem:[%s3891_s2 + $0x198] sm:$0xff]  ;;  %v3283_v6 = vld [vmem:[%s3891_s2 + $0x1a0] sm:$0xff] }
  0x1e   :  { %3943 = vst [vmem:[#allocation48_spill] sm:$0xff] %v3278_v5  ;;  %3944 = vst [vmem:[#allocation49_spill] sm:$0xff] %v3283_v6  ;;  %v3288_v7 = vld [vmem:[%s3891_s2 + $0x1a8] sm:$0xff]  ;;  %v3293_v8 = vld [vmem:[%s3891_s2 + $0x1b0] sm:$0xff] }
  0x1f   :  { %3945 = vst [vmem:[#allocation50_spill] sm:$0xff] %v3288_v7  ;;  %3946 = vst [vmem:[#allocation51_spill] sm:$0xff] %v3293_v8  ;;  %v3298_v9 = vld [vmem:[%s3891_s2 + $0x1b8] sm:$0xff]  ;;  %v3303_v10 = vld [vmem:[%s3891_s2 + $0x1c0] sm:$0xff] }
  0x20   :  { %3947 = vst [vmem:[#allocation52_spill] sm:$0xff] %v3298_v9  ;;  %3948 = vst [vmem:[#allocation53_spill] sm:$0xff] %v3303_v10  ;;  %v3308_v11 = vld [vmem:[%s3891_s2 + $0x1c8] sm:$0xff]  ;;  %v3313_v12 = vld [vmem:[%s3891_s2 + $0x1d0] sm:$0xff] }
  0x21   :  { %3949 = vst [vmem:[#allocation54_spill] sm:$0xff] %v3308_v11  ;;  %3950 = vst [vmem:[#allocation55_spill] sm:$0xff] %v3313_v12  ;;  %v3318_v13 = vld [vmem:[%s3891_s2 + $0x1d8] sm:$0xff]  ;;  %v3323_v14 = vld [vmem:[%s3891_s2 + $0x1e0] sm:$0xff] }
  0x22   :  { %3951 = vst [vmem:[#allocation56_spill] sm:$0xff] %v3318_v13  ;;  %3952 = vst [vmem:[#allocation57_spill] sm:$0xff] %v3323_v14  ;;  %v3328_v17 = vld [vmem:[%s3891_s2 + $0x1e8] sm:$0xff]  ;;  %v3333_v10 = vld [vmem:[%s3891_s2 + $0x1f0] sm:$0xff]  ;;  %v3893_v13 = vlaneseq }
  0x23   :  { %3953 = vst [vmem:[#allocation58_spill] sm:$0xff] %v3328_v17  ;;  %3954 = vst [vmem:[#allocation59_spill] sm:$0xff] %v3333_v10  ;;  %v3338_v12 = vld [vmem:[%s3891_s2 + $0x1f8] sm:$0xff]  ;;  %v39_v17 = vld [vmem:[%s3892_s3] sm:$0xf]  ;;  %s3359_s2 = smov 0  }
  0x24   :  { %3955 = vst [vmem:[#allocation60_spill] sm:$0xff] %v3338_v12  ;;  %v3341_v11 = vshrl.u32 %v3893_v13, 7 }
  0x26   :  { %3956 = vst [vmem:[#allocation61_spill] sm:$0xff] %v3341_v11  ;;  %v3344_v14 = vsub.s32 0, %v3341_v11  ;;  %v51_v8 = vsub.s32 2, %v3341_v11  ;;  %v47_v10 = vsub.s32 1, %v3341_v11  ;;  %v55_v4 = vsub.s32 3, %v3341_v11 }
  0x28   :  { %3957 = vst [vmem:[#allocation62_spill] sm:$0xff] %v3344_v14  ;;  %v44_v6 = vrot.slane %v39_v17, %v3344_v14  ;;  %v52_v12 = vrot.slane %v39_v17, %v51_v8  ;;  %v48_v2 = vrot.slane %v39_v17, %v47_v10  ;;  %v56_v9 = vrot.slane %v39_v17, %v55_v4 }
  0xdd   :  { %v147_v13 = vpop.f32.mrb[0].mxu0  ;;  %v224_v5 = vpop.f32.mrb[0].mxu1 }
  0xde   :  { %v148_v7 = vadd.f32 %v147_v13, %v44_v6  ;;  %v225_v3 = vadd.f32 %v224_v5, %v52_v12  ;;  %v149_v0 = vpop.f32.mrb[1].mxu0  ;;  %v226_v60 = vpop.f32.mrb[1].mxu1 }
  0xdf   :  { %v150_v62 = vadd.f32 %v149_v0, %v48_v2  ;;  %v227_v58 = vadd.f32 %v226_v60, %v56_v9 }
  0xe0   :  { %235 = vst [vmem:[#allocation2] sm:$0xff] %v148_v7  ;;  %237 = vst [vmem:[#allocation2 + $0x10] sm:$0xff] %v225_v3 }
  0xe1   :  { %236 = vst [vmem:[#allocation2 + $0x8] sm:$0xff] %v150_v62  ;;  %238 = vst [vmem:[#allocation2 + $0x18] sm:$0xff] %v227_v58  ;;  %v153_v1 = vpop.f32.mrb[2].mxu0  ;;  %v230_v61 = vpop.f32.mrb[2].mxu1 }
  0xe2   :  { %v154_v11 = vadd.f32 %v153_v1, %v44_v6  ;;  %v231_v63 = vadd.f32 %v230_v61, %v52_v12  ;;  %v155_v14 = vpop.f32.mrb[3].mxu0  ;;  %v232_v8 = vpop.f32.mrb[3].mxu1 }
  0xe3   :  { %v156_v10 = vadd.f32 %v155_v14, %v48_v2  ;;  %v233_v4 = vadd.f32 %v232_v8, %v56_v9 }
  0xe4   :  { %239 = vst [vmem:[#allocation2 + $0x20] sm:$0xff] %v154_v11  ;;  %241 = vst [vmem:[#allocation2 + $0x30] sm:$0xff] %v231_v63 }
  0xe5   :  { %240 = vst [vmem:[#allocation2 + $0x28] sm:$0xff] %v156_v10  ;;  %242 = vst [vmem:[#allocation2 + $0x38] sm:$0xff] %v233_v4 }
  0xe6 LB: > { %v3958_v19 = vld [vmem:[#allocation7_spill] sm:$0xff]  ;;  %v3960_v21 = vld [vmem:[#allocation9_spill] sm:$0xff]  ;;  %v3962_v18 = vld [vmem:[#allocation6_spill] sm:$0xff]  ;;  %v3897_v6 = vmov 0.0   ;;  %v3452_v17 = vpack.c.bf16 %v3208_v55, %v3188_v51  ;;  %v3456_v8 = vpack.c.bf16 %v3218_v57, %v3198_v53  ;;  %v3462_v10 = vpack.c.bf16 %v3203_v54, %v3183_v50  ;;  %s3571_s3 = sshll.u32 %s2932_s2, 3  ;;  %s314_s2 = sadd.s32 1, %s2932_s2   ;;  %s2932_s2 = sphi %s3359_s2, %s314_s2   ;;  %v2928_v15 = vphi %v3013_v15, %v4017_v15   ;;  %v2924_v16 = vphi %v3015_v16, %v4016_v16  }
  0xe7   : > { %v3959_v23 = vld [vmem:[#allocation11_spill] sm:$0xff]  ;;  %v3961_v25 = vld [vmem:[#allocation13_spill] sm:$0xff]  ;;  %v3963_v22 = vld [vmem:[#allocation10_spill] sm:$0xff]  ;;  %388 = vmatprep.mubr.f32.mxu0 %v3897_v6  ;;  %459 = vmatprep.mubr.f32.mxu1 %v3897_v6  ;;  %v3466_v4 = vpack.c.bf16 %v3213_v56, %v3193_v52  ;;  %s318_s16 = sshra.s32 %s3571_s3, 3  ;;  %s527_s19 = sadd.s32 1, %s3571_s3  ;;  %vm2060_vm4 = vcmask 1040384  }
  0xe8   : > { %v3372_v58 = vpack.c.bf16 %v3959_v23, %v3958_v19  ;;  %v3376_v60 = vpack.c.bf16 %v3961_v25, %v3960_v21  ;;  %v3380_v61 = vpack.c.bf16 %v3963_v22, %v3962_v18  ;;  %v3964_v20 = vld [vmem:[#allocation8_spill] sm:$0xff]  ;;  %v3966_v27 = vld [vmem:[#allocation15_spill] sm:$0xff]  ;;  %v3968_v29 = vld [vmem:[#allocation17_spill] sm:$0xff]  ;;  %s2218_s17 = sshll.u32 %s318_s16, 5  ;;  %s528_s20 = sshra.s32 %s527_s19, 3  ;;  %vm2062_vm5 = vcmask 1041408  }
  0xe9   : > { %v3965_v24 = vld [vmem:[#allocation12_spill] sm:$0xff]  ;;  %v3967_v31 = vld [vmem:[#allocation19_spill] sm:$0xff]  ;;  %v3969_v33 = vld [vmem:[#allocation21_spill] sm:$0xff]  ;;  %s322_s18 = scalar_lea.vmem [#allocation2], %s2218_s17  ;;  %s531_s21 = sand.u32 7, %s527_s19  ;;  %vm2064_vm6 = vcmask 1042432  }
  0xea   : > { %v3384_v62 = vpack.c.bf16 %v3965_v24, %v3964_v20  ;;  %v3388_v63 = vpack.c.bf16 %v3967_v31, %v3966_v27  ;;  %v3392_v0 = vpack.c.bf16 %v3969_v33, %v3968_v29  ;;  %2239 = vmatprep.subr.bf16.mxu0 %v3372_v58  ;;  %2271 = vmatprep.subr.bf16.mxu1 %v3376_v60  ;;  %v3970_v26 = vld [vmem:[#allocation14_spill] sm:$0xff]  ;;  %v3972_v28 = vld [vmem:[#allocation16_spill] sm:$0xff]  ;;  %v3974_v35 = vld [vmem:[#allocation23_spill] sm:$0xff]  ;;  %s2219_s22 = sshll.u32 %s528_s20, 5  ;;  %s740_s24 = sadd.s32 2, %s3571_s3  ;;  %vm2067_vm7 = vcmask 1044480  }
  0xeb   : > { %2241 = vmatpush1.bf16.msra.mxu0 %v3380_v61  ;;  %v3971_v30 = vld [vmem:[#allocation18_spill] sm:$0xff]  ;;  %v3973_v32 = vld [vmem:[#allocation20_spill] sm:$0xff]  ;;  %v3975_v39 = vld [vmem:[#allocation27_spill] sm:$0xff]  ;;  %s534_s23 = sadd.s32 %s2219_s22, %s531_s21  ;;  %s741_s25 = sshra.s32 %s740_s24, 3  ;;  %vm2069_vm8 = vcmask 1045504   ;;  %vm2071_vm9 = vcmask 1046528  }
  0xec   : > { %2273 = vmatpush1.bf16.msra.mxu1 %v3384_v62  ;;  %v3400_v1 = vpack.c.bf16 %v3971_v30, %v3970_v26  ;;  %v3404_v2 = vpack.c.bf16 %v3973_v32, %v3972_v28  ;;  %2243 = vmatprep.subr.bf16.mxu0 %v3388_v63  ;;  %v3410_v3 = vpack.c.bf16 %v3975_v39, %v3974_v35  ;;  %v3976_v37 = vld [vmem:[#allocation25_spill] sm:$0xff]  ;;  %v3978_v34 = vld [vmem:[#allocation22_spill] sm:$0xff]  ;;  %v3980_v36 = vld [vmem:[#allocation24_spill] sm:$0xff]  ;;  %s535_s0 = scalar_lea.vmem [#allocation2], %s534_s23  ;;  %s744_s26 = sand.u32 7, %s740_s24 }
  0xed   : > { %2275 = vmatprep.subr.bf16.mxu1 %v3392_v0  ;;  %v3977_v41 = vld [vmem:[#allocation29_spill] sm:$0xff]  ;;  %v3979_v38 = vld [vmem:[#allocation26_spill] sm:$0xff]  ;;  %v3981_v40 = vld [vmem:[#allocation28_spill] sm:$0xff]  ;;  %s2220_s27 = sshll.u32 %s741_s25, 5  ;;  %s953_s30 = sadd.s32 3, %s3571_s3 }
  0xee   : > { %v3414_v5 = vpack.c.bf16 %v3977_v41, %v3976_v37  ;;  %v3422_v7 = vpack.c.bf16 %v3979_v38, %v3978_v34  ;;  %v3426_v9 = vpack.c.bf16 %v3981_v40, %v3980_v36  ;;  %v3982_v43 = vld [vmem:[#allocation31_spill] sm:$0xff]  ;;  %v3984_v45 = vld [vmem:[#allocation33_spill] sm:$0xff]  ;;  %v3986_v42 = vld [vmem:[#allocation30_spill] sm:$0xff]  ;;  %s747_s28 = sadd.s32 %s2220_s27, %s744_s26  ;;  %s954_s7 = sshra.s32 %s953_s30, 3 }
  0xef   : > { %2245 = vmatpush1.bf16.msra.mxu0 %v3400_v1  ;;  %v3983_v47 = vld [vmem:[#allocation35_spill] sm:$0xff]  ;;  %v3985_v49 = vld [vmem:[#allocation37_spill] sm:$0xff]  ;;  %v3987_v46 = vld [vmem:[#allocation34_spill] sm:$0xff]  ;;  %s748_s29 = scalar_lea.vmem [#allocation2], %s747_s28  ;;  %s957_s8 = sand.u32 7, %s953_s30 }
  0xf0   : > { %2277 = vmatpush1.bf16.msra.mxu1 %v3404_v2  ;;  %2247 = vmatprep.subr.bf16.mxu0 %v3410_v3  ;;  %v3432_v11 = vpack.c.bf16 %v3983_v47, %v3982_v43  ;;  %v3436_v12 = vpack.c.bf16 %v3985_v49, %v3984_v45  ;;  %v3442_v13 = vpack.c.bf16 %v3987_v46, %v3986_v42  ;;  %v3988_v44 = vld [vmem:[#allocation32_spill] sm:$0xff]  ;;  %v3990_v6 = vld [vmem:[#allocation42_spill] sm:$0xff]  ;;  %v3994_v23 = vld [vmem:[#allocation41_spill] sm:$0xff]  ;;  %s2221_s9 = sshll.u32 %s954_s7, 5  ;;  %s1166_s12 = sadd.s32 4, %s3571_s3 }
  0xf1   : > { %2279 = vmatprep.subr.bf16.mxu1 %v3414_v5  ;;  %v3989_v48 = vld [vmem:[#allocation36_spill] sm:$0xff]  ;;  %v3472_v18 = vpack.c.bf16 %v3990_v6, %v3228_v59  ;;  %v3993_v22 = vld [vmem:[#allocation38_spill] sm:$0xff]  ;;  %v3995_v25 = vld [vmem:[#allocation39_spill] sm:$0xff]  ;;  %s960_s10 = sadd.s32 %s2221_s9, %s957_s8  ;;  %s1167_s13 = sshra.s32 %s1166_s12, 3 }
  0xf2   : > { %v3446_v14 = vpack.c.bf16 %v3989_v48, %v3988_v44  ;;  %v3991_v19 = vld [vmem:[#allocation40_spill] sm:$0xff]  ;;  %v3482_v24 = vpack.c.bf16 %v3994_v23, %v3993_v22  ;;  %v3996_v26 = vld [vmem:[#allocation43_spill] sm:$0xff]  ;;  %v3997_v6 = vld [vmem:[#allocation46_spill] sm:$0xff]  ;;  %s961_s11 = scalar_lea.vmem [#allocation2], %s960_s10  ;;  %s1170_s14 = sand.u32 7, %s1166_s12 }
  0xf3   : > { %2249 = vmatpush1.bf16.msra.mxu0 %v3422_v7  ;;  %v3992_v20 = vld [vmem:[#allocation44_spill] sm:$0xff]  ;;  %v3486_v27 = vpack.c.bf16 %v3996_v26, %v3995_v25  ;;  %v3998_v28 = vld [vmem:[#allocation50_spill] sm:$0xff]  ;;  %v4001_v22 = vld [vmem:[#allocation45_spill] sm:$0xff]  ;;  %s2222_s1 = sshll.u32 %s1167_s13, 5  ;;  %s1379_s17 = sadd.s32 5, %s3571_s3 }
  0xf4   : > { %2281 = vmatpush1.bf16.msra.mxu1 %v3426_v9  ;;  %2251 = vmatprep.subr.bf16.mxu0 %v3432_v11  ;;  %v3476_v21 = vpack.c.bf16 %v3992_v20, %v3991_v19  ;;  %v3492_v19 = vpack.c.bf16 %v3998_v28, %v3997_v6  ;;  %v3999_v20 = vld [vmem:[#allocation48_spill] sm:$0xff]  ;;  %v4002_v23 = vld [vmem:[#allocation49_spill] sm:$0xff]  ;;  %v4003_v26 = vld [vmem:[#allocation47_spill] sm:$0xff]  ;;  %s1173_s15 = sadd.s32 %s2222_s1, %s1170_s14  ;;  %s1383_s19 = sand.u32 7, %s1379_s17 }
  0xf5   : > { %2283 = vmatprep.subr.bf16.mxu1 %v3436_v12  ;;  %v4000_v29 = vld [vmem:[#allocation52_spill] sm:$0xff]  ;;  %v3502_v25 = vpack.c.bf16 %v4002_v23, %v4001_v22  ;;  %v4004_v31 = vld [vmem:[#allocation51_spill] sm:$0xff]  ;;  %v4005_v28 = vld [vmem:[#allocation54_spill] sm:$0xff]  ;;  %s1174_s16 = scalar_lea.vmem [#allocation2], %s1173_s15  ;;  %s1592_s23 = sadd.s32 6, %s3571_s3 }
  0xf6   : > { %v3496_v30 = vpack.c.bf16 %v4000_v29, %v3999_v20  ;;  %v3506_v32 = vpack.c.bf16 %v4004_v31, %v4003_v26  ;;  %v4006_v6 = vld [vmem:[#allocation58_spill] sm:$0xff]  ;;  %v4007_v20 = vld [vmem:[#allocation56_spill] sm:$0xff]  ;;  %v4009_v22 = vld [vmem:[#allocation53_spill] sm:$0xff]  ;;  %s1596_s24 = sand.u32 7, %s1592_s23  ;;  %s1805_s28 = sadd.s32 7, %s3571_s3 }
  0xf7   : > { %2253 = vmatpush1.bf16.msra.mxu0 %v3442_v13  ;;  %v3512_v29 = vpack.c.bf16 %v4006_v6, %v4005_v28  ;;  %v4008_v33 = vld [vmem:[#allocation60_spill] sm:$0xff]  ;;  %v4010_v23 = vld [vmem:[#allocation57_spill] sm:$0xff]  ;;  %v4011_v26 = vld [vmem:[#allocation55_spill] sm:$0xff]  ;;  %s1809_s30 = sand.u32 7, %s1805_s28  ;;  %s2073_s10 = scalar_lea.vmem [#allocation3], %s3571_s3 }
  0xf8   : > { %2285 = vmatpush1.bf16.msra.mxu1 %v3446_v14  ;;  %2255 = vmatprep.subr.bf16.mxu0 %v3452_v17  ;;  %v3516_v34 = vpack.c.bf16 %v4008_v33, %v4007_v20  ;;  %v3522_v31 = vpack.c.bf16 %v4010_v23, %v4009_v22  ;;  %v4012_v35 = vld [vmem:[#allocation59_spill] sm:$0xff]  ;;  %v4013_v33 = vmov 0.0   ;;  %v4014_v22 = vld [vmem:[#allocation61_spill] sm:$0xff]  ;;  %p311_p0 = scmp.ge.s32.totalorder %s314_s2, 2  }
  0xf9   : > { %2287 = vmatprep.subr.bf16.mxu1 %v3456_v8  ;;  %v3526_v36 = vpack.c.bf16 %v4012_v35, %v4011_v26  ;;  %v323_v42 = vld [vmem:[%s322_s18] ss:$8 sm:$0xf]  ;;  %s1380_s18 = sshra.s32 %s1379_s17, 3  ;;  %vm2124_vm11 = vcmask (%p311_p0), 64512  }
  0xfa   : > { %s2223_s20 = sshll.u32 %s1380_s18, 5  ;;  %v2216_v57 = vld [vmem:[%s3887_s4] ss:$0 sm:$0xff] (%p311_p0) }
  0xfb   : > { %2257 = vmatpush1.bf16.msra.mxu0 %v3462_v10  ;;  %s1386_s21 = sadd.s32 %s2223_s20, %s1383_s19 }
  0xfc   : > { %2289 = vmatpush1.bf16.msra.mxu1 %v3466_v4  ;;  %2259 = vmatprep.subr.bf16.mxu0 %v3472_v18  ;;  %s1387_s22 = scalar_lea.vmem [#allocation2], %s1386_s21 }
  0xfd   : > { %2291 = vmatprep.subr.bf16.mxu1 %v3476_v21 }
  0xff   : > { %2261 = vmatpush1.bf16.msra.mxu0 %v3482_v24 }
 0x100   : > { %2293 = vmatpush1.bf16.msra.mxu1 %v3486_v27  ;;  %2263 = vmatprep.subr.bf16.mxu0 %v3492_v19 }
 0x101   : > { %2295 = vmatprep.subr.bf16.mxu1 %v3496_v30 }
 0x103   : > { %2265 = vmatpush1.bf16.msra.mxu0 %v3502_v25 }
 0x104   : > { %2297 = vmatpush1.bf16.msra.mxu1 %v3506_v32  ;;  %2267 = vmatprep.subr.bf16.mxu0 %v3512_v29 }
 0x105   : > { %2299 = vmatprep.subr.bf16.mxu1 %v3516_v34 }
 0x107   : > { %2269 = vmatpush1.bf16.msra.mxu0 %v3522_v31 }
 0x108   : > { %2301 = vmatpush1.bf16.msra.mxu1 %v3526_v36  ;;  %2303 = vmatprep.subr.bf16.mxu0 %v3372_v58 }
 0x109   : > { %2335 = vmatprep.subr.bf16.mxu1 %v3376_v60 }
 0x10a   : > { %389 = vmatmul.mubr.f32.vlgmr.msra.gmra.mrb[0].mxu0 %v2928_v15 }
 0x10b   : > { %460 = vmatmul.mubr.f32.vlgmr.msra.gmra.mrb[0].mxu1 %v2928_v15  ;;  %2305 = vmatpush1.bf16.msra.mxu0 %v3380_v61  ;;  %v2937_v15 = vmov 1966171168  }
 0x10c   : > { %2337 = vmatpush1.bf16.msra.mxu1 %v3384_v62  ;;  %2307 = vmatprep.subr.bf16.mxu0 %v3388_v63  ;;  %v473_v35 = vunpack.c.l.s4 %v2937_v15 }
 0x10d   : > { %2339 = vmatprep.subr.bf16.mxu1 %v3392_v0  ;;  %601 = vmatprep.mubr.f32.mxu0 %v4013_v33 }
 0x10e   : > { %672 = vmatprep.mubr.f32.mxu1 %v4013_v33  ;;  %v474_v28 = vunpack.c.0.s8 %v473_v35 }
 0x10f   : > { %2309 = vmatpush1.bf16.msra.mxu0 %v3400_v1 }
 0x110   : > { %2341 = vmatpush1.bf16.msra.mxu1 %v3404_v2  ;;  %2311 = vmatprep.subr.bf16.mxu0 %v3410_v3  ;;  %v3575_v23 = vsub.s32 %v474_v28, %v4014_v22 }
 0x111   : > { %2343 = vmatprep.subr.bf16.mxu1 %v3414_v5 }
 0x113   : > { %2313 = vmatpush1.bf16.msra.mxu0 %v3422_v7 }
 0x114   : > { %2345 = vmatpush1.bf16.msra.mxu1 %v3426_v9  ;;  %2315 = vmatprep.subr.bf16.mxu0 %v3432_v11 }
 0x115   : > { %2347 = vmatprep.subr.bf16.mxu1 %v3436_v12 }
 0x117   : > { %2317 = vmatpush1.bf16.msra.mxu0 %v3442_v13 }
 0x118   : > { %2349 = vmatpush1.bf16.msra.mxu1 %v3446_v14  ;;  %2319 = vmatprep.subr.bf16.mxu0 %v3452_v17 }
 0x119   : > { %2351 = vmatprep.subr.bf16.mxu1 %v3456_v8 }
 0x11b   : > { %2321 = vmatpush1.bf16.msra.mxu0 %v3462_v10 }
 0x11c   : > { %2353 = vmatpush1.bf16.msra.mxu1 %v3466_v4  ;;  %2323 = vmatprep.subr.bf16.mxu0 %v3472_v18 }
 0x11d   : > { %2355 = vmatprep.subr.bf16.mxu1 %v3476_v21 }
 0x11f   : > { %2325 = vmatpush1.bf16.msra.mxu0 %v3482_v24 }
 0x120   : > { %2357 = vmatpush1.bf16.msra.mxu1 %v3486_v27  ;;  %2327 = vmatprep.subr.bf16.mxu0 %v3492_v19 }
 0x121   : > { %2359 = vmatprep.subr.bf16.mxu1 %v3496_v30 }
 0x123   : > { %2329 = vmatpush1.bf16.msra.mxu0 %v3502_v25 }
 0x124   : > { %2361 = vmatpush1.bf16.msra.mxu1 %v3506_v32  ;;  %2331 = vmatprep.subr.bf16.mxu0 %v3512_v29 }
 0x125   : > { %2363 = vmatprep.subr.bf16.mxu1 %v3516_v34 }
 0x127   : > { %2333 = vmatpush1.bf16.msra.mxu0 %v3522_v31 }
 0x128   : > { %2365 = vmatpush1.bf16.msra.mxu1 %v3526_v36  ;;  %2367 = vmatprep.subr.bf16.mxu0 %v3372_v58 }
 0x129   : > { %2399 = vmatprep.subr.bf16.mxu1 %v3376_v60 }
 0x1dd   : > { %v390_v6 = vpop.f32.mrb[0].mxu0 }
 0x1de   : > { %v461_v20 = vpop.f32.mrb[0].mxu1  ;;  %v392_v26 = vpop.f32.mrb[1].mxu0 }
 0x1df   : > { %v463_v37 = vpop.f32.mrb[1].mxu1  ;;  %v470_v38 = vcombine.low %v390_v6, %v392_v26 }
 0x1e0   : > { %v471_v39 = vcombine.low %v461_v20, %v463_v37 }
 0x1e1   : > { %v478_v40 = vrot.slane %v470_v38, %v3575_v23 }
 0x1e2   : > { %v485_v41 = vrot.slane %v471_v39, %v3575_v23 }
 0x1e4   : > { %v486_v15 = vcombine.low %v478_v40, %v485_v41 }
 0x1e6   : > { %v493_v35 = vrot.slane %v486_v15, %v3575_v23 }
 0x1e8   : > { %v495_v43 = vadd.f32 %v493_v35, %v323_v42 }
 0x1ea   : > { %v2178_v44 = vmul.f32 -1.442695, %v495_v43  ;;  %v503_v45 = vrot.slane %v495_v43, 1  ;;  %v514_v22 = vrot.slane %v495_v43, 3  ;;  %v511_v6 = vrot.slane %v495_v43, 2 }
 0x1ec   : > { %2778 = vpow2.f32 %v2178_v44  ;;  %v2179_v28 = vmul.f32 -1.442695, %v503_v45  ;;  %v2180_v46 = vmul.f32 -1.442695, %v514_v22 }
 0x1ee   : > { %2780 = vpow2.f32 %v2179_v28 }
 0x1ef   : > { %2782 = vpow2.f32 %v2180_v46 }
 0x1f6   : > { %v2779_v47 = vpop.eup %2778 }
 0x1f7   : > { %v499_v37 = vadd.f32 1.0, %v2779_v47 }
 0x1f8   : > { %v2781_v20 = vpop.eup %2780 }
 0x1f9   : > { %2784 = vrcp.f32 %v499_v37  ;;  %v508_v38 = vadd.f32 1.0, %v2781_v20  ;;  %v2783_v39 = vpop.eup %2782 }
 0x1fa   : > { %2786 = vtanh.f32 %v511_v6  ;;  %v519_v26 = vadd.f32 1.0, %v2783_v39 }
 0x1fb   : > { %2788 = vrcp.f32 %v508_v38 }
 0x1fc   : > { %2790 = vrcp.f32 %v519_v26 }
 0x203   : > { %v2785_v40 = vpop.eup %2784 }
 0x204   : > { %v2787_v41 = vpop.eup %2786 }
 0x205   : > { %v2789_v42 = vpop.eup %2788  ;;  %v523_v45 = vmul.f32 %v2787_v41, %v2785_v40  ;;  %v536_v40 = vld [vmem:[%s535_s0] ss:$8 sm:$0xf]  ;;  %s1593_s0 = sshra.s32 %s1592_s23, 3 }
 0x206   : > { %v522_v44 = vmul.f32 %v2924_v16, %v2789_v42  ;;  %v2791_v43 = vpop.eup %2790  ;;  %s2224_s25 = sshll.u32 %s1593_s0, 5 }
 0x207   : > { %s1599_s26 = sadd.s32 %s2224_s25, %s1596_s24 }
 0x208   : > { %v3581_v15 = vadd.f32 %v523_v45, %v522_v44  ;;  %s1600_s27 = scalar_lea.vmem [#allocation2], %s1599_s26 }
 0x20a   : > { %2792 = vtanh.f32 %v3581_v15 }
 0x214   : > { %v2793_v47 = vpop.eup %2792 }
 0x215   : > { %v3584_v46 = vmul.f32 %v2793_v47, %v2791_v43 }
 0x217   : > { %602 = vmatmul.mubr.f32.vlgmr.msra.gmra.mrb[2].mxu0 %v3584_v46  ;;  %673 = vmatmul.mubr.f32.vlgmr.msra.gmra.mrb[2].mxu1 %v3584_v46 }
 0x218   : > { %2369 = vmatpush1.bf16.msra.mxu0 %v3380_v61  ;;  %2401 = vmatpush1.bf16.msra.mxu1 %v3384_v62 }
 0x219   : > { %2371 = vmatprep.subr.bf16.mxu0 %v3388_v63  ;;  %2403 = vmatprep.subr.bf16.mxu1 %v3392_v0 }
 0x21a   : > { %814 = vmatprep.mubr.f32.mxu0 %v4013_v33  ;;  %885 = vmatprep.mubr.f32.mxu1 %v4013_v33 }
 0x21c   : > { %2373 = vmatpush1.bf16.msra.mxu0 %v3400_v1  ;;  %2405 = vmatpush1.bf16.msra.mxu1 %v3404_v2 }
 0x21d   : > { %2375 = vmatprep.subr.bf16.mxu0 %v3410_v3  ;;  %2407 = vmatprep.subr.bf16.mxu1 %v3414_v5 }
 0x220   : > { %2377 = vmatpush1.bf16.msra.mxu0 %v3422_v7  ;;  %2409 = vmatpush1.bf16.msra.mxu1 %v3426_v9 }
 0x221   : > { %2379 = vmatprep.subr.bf16.mxu0 %v3432_v11  ;;  %2411 = vmatprep.subr.bf16.mxu1 %v3436_v12 }
 0x224   : > { %2381 = vmatpush1.bf16.msra.mxu0 %v3442_v13  ;;  %2413 = vmatpush1.bf16.msra.mxu1 %v3446_v14 }
 0x225   : > { %2383 = vmatprep.subr.bf16.mxu0 %v3452_v17  ;;  %2415 = vmatprep.subr.bf16.mxu1 %v3456_v8 }
 0x228   : > { %2385 = vmatpush1.bf16.msra.mxu0 %v3462_v10  ;;  %2417 = vmatpush1.bf16.msra.mxu1 %v3466_v4 }
 0x229   : > { %2387 = vmatprep.subr.bf16.mxu0 %v3472_v18  ;;  %2419 = vmatprep.subr.bf16.mxu1 %v3476_v21 }
 0x22c   : > { %2389 = vmatpush1.bf16.msra.mxu0 %v3482_v24  ;;  %2421 = vmatpush1.bf16.msra.mxu1 %v3486_v27 }
 0x22d   : > { %2391 = vmatprep.subr.bf16.mxu0 %v3492_v19  ;;  %2423 = vmatprep.subr.bf16.mxu1 %v3496_v30 }
 0x230   : > { %2393 = vmatpush1.bf16.msra.mxu0 %v3502_v25  ;;  %2425 = vmatpush1.bf16.msra.mxu1 %v3506_v32 }
 0x231   : > { %2395 = vmatprep.subr.bf16.mxu0 %v3512_v29  ;;  %2427 = vmatprep.subr.bf16.mxu1 %v3516_v34 }
 0x234   : > { %2397 = vmatpush1.bf16.msra.mxu0 %v3522_v31  ;;  %2429 = vmatpush1.bf16.msra.mxu1 %v3526_v36 }
 0x235   : > { %2431 = vmatprep.subr.bf16.mxu0 %v3372_v58  ;;  %2463 = vmatprep.subr.bf16.mxu1 %v3376_v60 }
 0x2ea   : > { %v603_v16 = vpop.f32.mrb[2].mxu0  ;;  %v674_v35 = vpop.f32.mrb[2].mxu1 }
 0x2eb   : > { %v605_v28 = vpop.f32.mrb[3].mxu0  ;;  %v676_v22 = vpop.f32.mrb[3].mxu1 }
 0x2ec   : > { %v683_v6 = vcombine.low %v603_v16, %v605_v28  ;;  %v684_v37 = vcombine.low %v674_v35, %v676_v22 }
 0x2ee   : > { %v691_v20 = vrot.slane %v683_v6, %v3575_v23  ;;  %v698_v38 = vrot.slane %v684_v37, %v3575_v23 }
 0x2f0   : > { %v699_v39 = vcombine.low %v691_v20, %v698_v38 }
 0x2f2   : > { %v706_v41 = vrot.slane %v699_v39, %v3575_v23 }
 0x2f4   : > { %v708_v42 = vadd.f32 %v706_v41, %v536_v40 }
 0x2f6   : > { %v2183_v26 = vmul.f32 -1.442695, %v708_v42  ;;  %v716_v44 = vrot.slane %v708_v42, 1  ;;  %v727_v43 = vrot.slane %v708_v42, 3  ;;  %v724_v16 = vrot.slane %v708_v42, 2 }
 0x2f8   : > { %2794 = vpow2.f32 %v2183_v26  ;;  %v2184_v45 = vmul.f32 -1.442695, %v716_v44  ;;  %v2185_v47 = vmul.f32 -1.442695, %v727_v43 }
 0x2fa   : > { %2796 = vpow2.f32 %v2184_v45 }
 0x2fb   : > { %2798 = vpow2.f32 %v2185_v47 }
 0x302   : > { %v2795_v48 = vpop.eup %2794 }
 0x303   : > { %v712_v35 = vadd.f32 1.0, %v2795_v48 }
 0x304   : > { %v2797_v28 = vpop.eup %2796 }
 0x305   : > { %2800 = vrcp.f32 %v712_v35  ;;  %v721_v22 = vadd.f32 1.0, %v2797_v28  ;;  %v2799_v6 = vpop.eup %2798 }
 0x306   : > { %2802 = vtanh.f32 %v724_v16  ;;  %v732_v39 = vadd.f32 1.0, %v2799_v6 }
 0x307   : > { %2804 = vrcp.f32 %v721_v22 }
 0x308   : > { %2806 = vrcp.f32 %v732_v39 }
 0x30f   : > { %v2801_v37 = vpop.eup %2800 }
 0x310   : > { %v2803_v20 = vpop.eup %2802 }
 0x311   : > { %v2805_v38 = vpop.eup %2804  ;;  %v736_v41 = vmul.f32 %v2803_v20, %v2801_v37  ;;  %v749_v37 = vld [vmem:[%s748_s29] ss:$8 sm:$0xf]  ;;  %s1806_s29 = sshra.s32 %s1805_s28, 3 }
 0x312   : > { %v735_v40 = vmul.f32 %v2805_v38, %v3581_v15  ;;  %v2807_v48 = vpop.eup %2806  ;;  %s2225_s7 = sshll.u32 %s1806_s29, 5 }
 0x313   : > { %s1812_s8 = sadd.s32 %s2225_s7, %s1809_s30 }
 0x314   : > { %v3627_v26 = vadd.f32 %v736_v41, %v735_v40  ;;  %s1813_s9 = scalar_lea.vmem [#allocation2], %s1812_s8 }
 0x316   : > { %2808 = vtanh.f32 %v3627_v26 }
 0x320   : > { %v2809_v42 = vpop.eup %2808 }
 0x321   : > { %v3630_v44 = vmul.f32 %v2809_v42, %v2807_v48 }
 0x323   : > { %815 = vmatmul.mubr.f32.vlgmr.msra.gmra.mrb[4].mxu0 %v3630_v44  ;;  %886 = vmatmul.mubr.f32.vlgmr.msra.gmra.mrb[4].mxu1 %v3630_v44 }
 0x324   : > { %2433 = vmatpush1.bf16.msra.mxu0 %v3380_v61  ;;  %2465 = vmatpush1.bf16.msra.mxu1 %v3384_v62 }
 0x325   : > { %2435 = vmatprep.subr.bf16.mxu0 %v3388_v63  ;;  %2467 = vmatprep.subr.bf16.mxu1 %v3392_v0 }
 0x326   : > { %1027 = vmatprep.mubr.f32.mxu0 %v4013_v33  ;;  %1098 = vmatprep.mubr.f32.mxu1 %v4013_v33 }
 0x328   : > { %2437 = vmatpush1.bf16.msra.mxu0 %v3400_v1  ;;  %2469 = vmatpush1.bf16.msra.mxu1 %v3404_v2 }
 0x329   : > { %2439 = vmatprep.subr.bf16.mxu0 %v3410_v3  ;;  %2471 = vmatprep.subr.bf16.mxu1 %v3414_v5 }
 0x32c   : > { %2441 = vmatpush1.bf16.msra.mxu0 %v3422_v7  ;;  %2473 = vmatpush1.bf16.msra.mxu1 %v3426_v9 }
 0x32d   : > { %2443 = vmatprep.subr.bf16.mxu0 %v3432_v11  ;;  %2475 = vmatprep.subr.bf16.mxu1 %v3436_v12 }
 0x330   : > { %2445 = vmatpush1.bf16.msra.mxu0 %v3442_v13  ;;  %2477 = vmatpush1.bf16.msra.mxu1 %v3446_v14 }
 0x331   : > { %2447 = vmatprep.subr.bf16.mxu0 %v3452_v17  ;;  %2479 = vmatprep.subr.bf16.mxu1 %v3456_v8 }
 0x334   : > { %2449 = vmatpush1.bf16.msra.mxu0 %v3462_v10  ;;  %2481 = vmatpush1.bf16.msra.mxu1 %v3466_v4 }
 0x335   : > { %2451 = vmatprep.subr.bf16.mxu0 %v3472_v18  ;;  %2483 = vmatprep.subr.bf16.mxu1 %v3476_v21 }
 0x338   : > { %2453 = vmatpush1.bf16.msra.mxu0 %v3482_v24  ;;  %2485 = vmatpush1.bf16.msra.mxu1 %v3486_v27 }
 0x339   : > { %2455 = vmatprep.subr.bf16.mxu0 %v3492_v19  ;;  %2487 = vmatprep.subr.bf16.mxu1 %v3496_v30 }
 0x33c   : > { %2457 = vmatpush1.bf16.msra.mxu0 %v3502_v25  ;;  %2489 = vmatpush1.bf16.msra.mxu1 %v3506_v32 }
 0x33d   : > { %2459 = vmatprep.subr.bf16.mxu0 %v3512_v29  ;;  %2491 = vmatprep.subr.bf16.mxu1 %v3516_v34 }
 0x340   : > { %2461 = vmatpush1.bf16.msra.mxu0 %v3522_v31  ;;  %2493 = vmatpush1.bf16.msra.mxu1 %v3526_v36 }
 0x341   : > { %2495 = vmatprep.subr.bf16.mxu0 %v3372_v58  ;;  %2527 = vmatprep.subr.bf16.mxu1 %v3376_v60 }
 0x3f6   : > { %v816_v15 = vpop.f32.mrb[4].mxu0  ;;  %v887_v45 = vpop.f32.mrb[4].mxu1 }
 0x3f7   : > { %v818_v43 = vpop.f32.mrb[5].mxu0  ;;  %v889_v47 = vpop.f32.mrb[5].mxu1 }
 0x3f8   : > { %v896_v16 = vcombine.low %v816_v15, %v818_v43  ;;  %v897_v35 = vcombine.low %v887_v45, %v889_v47 }
 0x3fa   : > { %v904_v28 = vrot.slane %v896_v16, %v3575_v23  ;;  %v911_v22 = vrot.slane %v897_v35, %v3575_v23 }
 0x3fc   : > { %v912_v6 = vcombine.low %v904_v28, %v911_v22 }
 0x3fe   : > { %v919_v20 = vrot.slane %v912_v6, %v3575_v23 }
 0x400   : > { %v921_v38 = vadd.f32 %v919_v20, %v749_v37 }
 0x402   : > { %v2188_v39 = vmul.f32 -1.442695, %v921_v38  ;;  %v929_v40 = vrot.slane %v921_v38, 1  ;;  %v940_v48 = vrot.slane %v921_v38, 3  ;;  %v937_v15 = vrot.slane %v921_v38, 2 }
 0x404   : > { %2810 = vpow2.f32 %v2188_v39  ;;  %v2189_v41 = vmul.f32 -1.442695, %v929_v40  ;;  %v2190_v42 = vmul.f32 -1.442695, %v940_v48  ;;  %v4015_v40 = vld [vmem:[#allocation62_spill] sm:$0xff] }
 0x406   : > { %2812 = vpow2.f32 %v2189_v41  ;;  %v2022_v41 = vrot.slane %v3630_v44, %v4015_v40 }
 0x407   : > { %2814 = vpow2.f32 %v2190_v42 }
 0x40e   : > { %v2811_v49 = vpop.eup %2810 }
 0x40f   : > { %v925_v45 = vadd.f32 1.0, %v2811_v49 }
 0x410   : > { %v2813_v43 = vpop.eup %2812 }
 0x411   : > { %2816 = vrcp.f32 %v925_v45  ;;  %v934_v47 = vadd.f32 1.0, %v2813_v43  ;;  %v2815_v16 = vpop.eup %2814 }
 0x412   : > { %2818 = vtanh.f32 %v937_v15  ;;  %v945_v6 = vadd.f32 1.0, %v2815_v16 }
 0x413   : > { %2820 = vrcp.f32 %v934_v47 }
 0x414   : > { %2822 = vrcp.f32 %v945_v6  ;;  %v962_v6 = vld [vmem:[%s961_s11] ss:$8 sm:$0xf] }
 0x41b   : > { %v2817_v35 = vpop.eup %2816 }
 0x41c   : > { %v2819_v28 = vpop.eup %2818 }
 0x41d   : > { %v2821_v22 = vpop.eup %2820  ;;  %v949_v20 = vmul.f32 %v2819_v28, %v2817_v35 }
 0x41e   : > { %v948_v37 = vmul.f32 %v2821_v22, %v3627_v26  ;;  %v2823_v49 = vpop.eup %2822  ;;  %v2061_v26 = vsel %vm2060_vm4, %v3584_v46, %v2022_v41 }
 0x420   : > { %v3673_v39 = vadd.f32 %v949_v20, %v948_v37 }
 0x422   : > { %2824 = vtanh.f32 %v3673_v39 }
 0x42c   : > { %v2825_v38 = vpop.eup %2824 }
 0x42d   : > { %v952_v48 = vmul.f32 %v2825_v38, %v2823_v49 }
 0x42f   : > { %1028 = vmatmul.mubr.f32.vlgmr.msra.gmra.mrb[6].mxu0 %v952_v48  ;;  %v2028_v42 = vrot.slane %v952_v48, %v4015_v40  ;;  %1099 = vmatmul.mubr.f32.vlgmr.msra.gmra.mrb[6].mxu1 %v952_v48 }
 0x430   : > { %2497 = vmatpush1.bf16.msra.mxu0 %v3380_v61  ;;  %2529 = vmatpush1.bf16.msra.mxu1 %v3384_v62 }
 0x431   : > { %v3682_v15 = vsel %vm2062_vm5, %v2061_v26, %v2028_v42  ;;  %2499 = vmatprep.subr.bf16.mxu0 %v3388_v63  ;;  %2531 = vmatprep.subr.bf16.mxu1 %v3392_v0 }
 0x432   : > { %1240 = vmatprep.mubr.f32.mxu0 %v4013_v33  ;;  %1311 = vmatprep.mubr.f32.mxu1 %v4013_v33 }
 0x434   : > { %2501 = vmatpush1.bf16.msra.mxu0 %v3400_v1  ;;  %2533 = vmatpush1.bf16.msra.mxu1 %v3404_v2 }
 0x435   : > { %2503 = vmatprep.subr.bf16.mxu0 %v3410_v3  ;;  %2535 = vmatprep.subr.bf16.mxu1 %v3414_v5 }
 0x438   : > { %2505 = vmatpush1.bf16.msra.mxu0 %v3422_v7  ;;  %2537 = vmatpush1.bf16.msra.mxu1 %v3426_v9 }
 0x439   : > { %2507 = vmatprep.subr.bf16.mxu0 %v3432_v11  ;;  %2539 = vmatprep.subr.bf16.mxu1 %v3436_v12 }
 0x43c   : > { %2509 = vmatpush1.bf16.msra.mxu0 %v3442_v13  ;;  %2541 = vmatpush1.bf16.msra.mxu1 %v3446_v14 }
 0x43d   : > { %2511 = vmatprep.subr.bf16.mxu0 %v3452_v17  ;;  %2543 = vmatprep.subr.bf16.mxu1 %v3456_v8 }
 0x440   : > { %2513 = vmatpush1.bf16.msra.mxu0 %v3462_v10  ;;  %2545 = vmatpush1.bf16.msra.mxu1 %v3466_v4 }
 0x441   : > { %2515 = vmatprep.subr.bf16.mxu0 %v3472_v18  ;;  %2547 = vmatprep.subr.bf16.mxu1 %v3476_v21 }
 0x444   : > { %2517 = vmatpush1.bf16.msra.mxu0 %v3482_v24  ;;  %2549 = vmatpush1.bf16.msra.mxu1 %v3486_v27 }
 0x445   : > { %2519 = vmatprep.subr.bf16.mxu0 %v3492_v19  ;;  %2551 = vmatprep.subr.bf16.mxu1 %v3496_v30 }
 0x448   : > { %2521 = vmatpush1.bf16.msra.mxu0 %v3502_v25  ;;  %2553 = vmatpush1.bf16.msra.mxu1 %v3506_v32 }
 0x449   : > { %2523 = vmatprep.subr.bf16.mxu0 %v3512_v29  ;;  %2555 = vmatprep.subr.bf16.mxu1 %v3516_v34 }
 0x44c   : > { %2525 = vmatpush1.bf16.msra.mxu0 %v3522_v31  ;;  %2557 = vmatpush1.bf16.msra.mxu1 %v3526_v36 }
 0x44d   : > { %2559 = vmatprep.subr.bf16.mxu0 %v3372_v58  ;;  %2591 = vmatprep.subr.bf16.mxu1 %v3376_v60 }
 0x502   : > { %v1029_v46 = vpop.f32.mrb[6].mxu0  ;;  %v1100_v44 = vpop.f32.mrb[6].mxu1 }
 0x503   : > { %v1031_v45 = vpop.f32.mrb[7].mxu0  ;;  %v1102_v43 = vpop.f32.mrb[7].mxu1 }
 0x504   : > { %v1109_v47 = vcombine.low %v1029_v46, %v1031_v45  ;;  %v1110_v16 = vcombine.low %v1100_v44, %v1102_v43 }
 0x506   : > { %v1117_v35 = vrot.slane %v1109_v47, %v3575_v23  ;;  %v1124_v28 = vrot.slane %v1110_v16, %v3575_v23 }
 0x508   : > { %v1125_v22 = vcombine.low %v1117_v35, %v1124_v28 }
 0x50a   : > { %v1132_v37 = vrot.slane %v1125_v22, %v3575_v23 }
 0x50c   : > { %v1134_v20 = vadd.f32 %v1132_v37, %v962_v6 }
 0x50e   : > { %v2193_v49 = vmul.f32 -1.442695, %v1134_v20  ;;  %v1142_v38 = vrot.slane %v1134_v20, 1  ;;  %v1153_v48 = vrot.slane %v1134_v20, 3  ;;  %v1150_v46 = vrot.slane %v1134_v20, 2 }
 0x510   : > { %2826 = vpow2.f32 %v2193_v49  ;;  %v2194_v41 = vmul.f32 -1.442695, %v1142_v38  ;;  %v2195_v42 = vmul.f32 -1.442695, %v1153_v48 }
 0x512   : > { %2828 = vpow2.f32 %v2194_v41 }
 0x513   : > { %2830 = vpow2.f32 %v2195_v42 }
 0x51a   : > { %v2827_v26 = vpop.eup %2826 }
 0x51b   : > { %v1138_v44 = vadd.f32 1.0, %v2827_v26 }
 0x51c   : > { %v2829_v45 = vpop.eup %2828 }
 0x51d   : > { %2832 = vrcp.f32 %v1138_v44  ;;  %v1147_v43 = vadd.f32 1.0, %v2829_v45  ;;  %v2831_v47 = vpop.eup %2830 }
 0x51e   : > { %2834 = vtanh.f32 %v1150_v46  ;;  %v1158_v22 = vadd.f32 1.0, %v2831_v47 }
 0x51f   : > { %2836 = vrcp.f32 %v1147_v43 }
 0x520   : > { %2838 = vrcp.f32 %v1158_v22 }
 0x527   : > { %v2833_v16 = vpop.eup %2832 }
 0x528   : > { %v2835_v35 = vpop.eup %2834 }
 0x529   : > { %v2837_v28 = vpop.eup %2836  ;;  %v1162_v37 = vmul.f32 %v2835_v35, %v2833_v16  ;;  %v1175_v35 = vld [vmem:[%s1174_s16] ss:$8 sm:$0xf] }
 0x52a   : > { %v1161_v6 = vmul.f32 %v2837_v28, %v3673_v39  ;;  %v2839_v20 = vpop.eup %2838 }
 0x52c   : > { %v3721_v49 = vadd.f32 %v1162_v37, %v1161_v6 }
 0x52e   : > { %2840 = vtanh.f32 %v3721_v49 }
 0x538   : > { %v2841_v38 = vpop.eup %2840 }
 0x539   : > { %v1165_v41 = vmul.f32 %v2841_v38, %v2839_v20 }
 0x53b   : > { %1241 = vmatmul.mubr.f32.vlgmr.msra.gmra.mrb[8].mxu0 %v1165_v41  ;;  %v2034_v48 = vrot.slane %v1165_v41, %v4015_v40  ;;  %1312 = vmatmul.mubr.f32.vlgmr.msra.gmra.mrb[8].mxu1 %v1165_v41 }
 0x53c   : > { %2561 = vmatpush1.bf16.msra.mxu0 %v3380_v61  ;;  %2593 = vmatpush1.bf16.msra.mxu1 %v3384_v62 }
 0x53d   : > { %2563 = vmatprep.subr.bf16.mxu0 %v3388_v63  ;;  %2595 = vmatprep.subr.bf16.mxu1 %v3392_v0  ;;  %v3730_v39 = vsel %vm2064_vm6, %v3682_v15, %v2034_v48 }
 0x53e   : > { %1453 = vmatprep.mubr.f32.mxu0 %v4013_v33  ;;  %1524 = vmatprep.mubr.f32.mxu1 %v4013_v33 }
 0x540   : > { %2565 = vmatpush1.bf16.msra.mxu0 %v3400_v1  ;;  %2597 = vmatpush1.bf16.msra.mxu1 %v3404_v2 }
 0x541   : > { %2567 = vmatprep.subr.bf16.mxu0 %v3410_v3  ;;  %2599 = vmatprep.subr.bf16.mxu1 %v3414_v5 }
 0x544   : > { %2569 = vmatpush1.bf16.msra.mxu0 %v3422_v7  ;;  %2601 = vmatpush1.bf16.msra.mxu1 %v3426_v9 }
 0x545   : > { %2571 = vmatprep.subr.bf16.mxu0 %v3432_v11  ;;  %2603 = vmatprep.subr.bf16.mxu1 %v3436_v12 }
 0x548   : > { %2573 = vmatpush1.bf16.msra.mxu0 %v3442_v13  ;;  %2605 = vmatpush1.bf16.msra.mxu1 %v3446_v14 }
 0x549   : > { %2575 = vmatprep.subr.bf16.mxu0 %v3452_v17  ;;  %2607 = vmatprep.subr.bf16.mxu1 %v3456_v8 }
 0x54c   : > { %2577 = vmatpush1.bf16.msra.mxu0 %v3462_v10  ;;  %2609 = vmatpush1.bf16.msra.mxu1 %v3466_v4 }
 0x54d   : > { %2579 = vmatprep.subr.bf16.mxu0 %v3472_v18  ;;  %2611 = vmatprep.subr.bf16.mxu1 %v3476_v21 }
 0x550   : > { %2581 = vmatpush1.bf16.msra.mxu0 %v3482_v24  ;;  %2613 = vmatpush1.bf16.msra.mxu1 %v3486_v27 }
 0x551   : > { %2583 = vmatprep.subr.bf16.mxu0 %v3492_v19  ;;  %2615 = vmatprep.subr.bf16.mxu1 %v3496_v30 }
 0x554   : > { %2585 = vmatpush1.bf16.msra.mxu0 %v3502_v25  ;;  %2617 = vmatpush1.bf16.msra.mxu1 %v3506_v32 }
 0x555   : > { %2587 = vmatprep.subr.bf16.mxu0 %v3512_v29  ;;  %2619 = vmatprep.subr.bf16.mxu1 %v3516_v34 }
 0x558   : > { %2589 = vmatpush1.bf16.msra.mxu0 %v3522_v31  ;;  %2621 = vmatpush1.bf16.msra.mxu1 %v3526_v36 }
 0x559   : > { %2623 = vmatprep.subr.bf16.mxu0 %v3372_v58  ;;  %2655 = vmatprep.subr.bf16.mxu1 %v3376_v60 }
 0x60e   : > { %v1242_v15 = vpop.f32.mrb[8].mxu0  ;;  %v1313_v42 = vpop.f32.mrb[8].mxu1 }
 0x60f   : > { %v1244_v26 = vpop.f32.mrb[9].mxu0  ;;  %v1315_v46 = vpop.f32.mrb[9].mxu1 }
 0x610   : > { %v1322_v44 = vcombine.low %v1242_v15, %v1244_v26  ;;  %v1323_v45 = vcombine.low %v1313_v42, %v1315_v46 }
 0x612   : > { %v1330_v43 = vrot.slane %v1322_v44, %v3575_v23  ;;  %v1337_v47 = vrot.slane %v1323_v45, %v3575_v23 }
 0x614   : > { %v1338_v16 = vcombine.low %v1330_v43, %v1337_v47 }
 0x616   : > { %v1345_v28 = vrot.slane %v1338_v16, %v3575_v23 }
 0x618   : > { %v1347_v22 = vadd.f32 %v1345_v28, %v1175_v35 }
 0x61a   : > { %v2198_v6 = vmul.f32 -1.442695, %v1347_v22  ;;  %v1355_v37 = vrot.slane %v1347_v22, 1  ;;  %v1366_v38 = vrot.slane %v1347_v22, 3  ;;  %v1363_v15 = vrot.slane %v1347_v22, 2 }
 0x61c   : > { %2842 = vpow2.f32 %v2198_v6  ;;  %v2199_v20 = vmul.f32 -1.442695, %v1355_v37  ;;  %v2200_v41 = vmul.f32 -1.442695, %v1366_v38 }
 0x61e   : > { %2844 = vpow2.f32 %v2199_v20 }
 0x61f   : > { %2846 = vpow2.f32 %v2200_v41 }
 0x626   : > { %v2843_v48 = vpop.eup %2842 }
 0x627   : > { %v1351_v42 = vadd.f32 1.0, %v2843_v48 }
 0x628   : > { %v2845_v26 = vpop.eup %2844 }
 0x629   : > { %2848 = vrcp.f32 %v1351_v42  ;;  %v1360_v46 = vadd.f32 1.0, %v2845_v26  ;;  %v2847_v44 = vpop.eup %2846 }
 0x62a   : > { %2850 = vtanh.f32 %v1363_v15  ;;  %v1371_v16 = vadd.f32 1.0, %v2847_v44 }
 0x62b   : > { %2852 = vrcp.f32 %v1360_v46 }
 0x62c   : > { %2854 = vrcp.f32 %v1371_v16 }
 0x633   : > { %v2849_v45 = vpop.eup %2848 }
 0x634   : > { %v2851_v43 = vpop.eup %2850 }
 0x635   : > { %v2853_v47 = vpop.eup %2852  ;;  %v1375_v28 = vmul.f32 %v2851_v43, %v2849_v45 }
 0x636   : > { %v1374_v35 = vmul.f32 %v2853_v47, %v3721_v49  ;;  %v2855_v22 = vpop.eup %2854 }
 0x638   : > { %v3767_v6 = vadd.f32 %v1375_v28, %v1374_v35 }
 0x63a   : > { %2856 = vtanh.f32 %v3767_v6 }
 0x644   : > { %v2857_v37 = vpop.eup %2856 }
 0x645   : > { %v1378_v20 = vmul.f32 %v2857_v37, %v2855_v22 }
 0x647   : > { %1454 = vmatmul.mubr.f32.vlgmr.msra.gmra.mrb[10].mxu0 %v1378_v20  ;;  %v2040_v38 = vrot.slane %v1378_v20, %v4015_v40  ;;  %1525 = vmatmul.mubr.f32.vlgmr.msra.gmra.mrb[10].mxu1 %v1378_v20 }
 0x648   : > { %2625 = vmatpush1.bf16.msra.mxu0 %v3380_v61  ;;  %2657 = vmatpush1.bf16.msra.mxu1 %v3384_v62 }
 0x649   : > { %v3775_v49 = vsel %vm68_vm0, %v3730_v39, %v2040_v38  ;;  %2627 = vmatprep.subr.bf16.mxu0 %v3388_v63  ;;  %2659 = vmatprep.subr.bf16.mxu1 %v3392_v0 }
 0x64a   : > { %1666 = vmatprep.mubr.f32.mxu0 %v4013_v33  ;;  %1737 = vmatprep.mubr.f32.mxu1 %v4013_v33 }
 0x64c   : > { %2629 = vmatpush1.bf16.msra.mxu0 %v3400_v1  ;;  %2661 = vmatpush1.bf16.msra.mxu1 %v3404_v2 }
 0x64d   : > { %2631 = vmatprep.subr.bf16.mxu0 %v3410_v3  ;;  %2663 = vmatprep.subr.bf16.mxu1 %v3414_v5 }
 0x650   : > { %2633 = vmatpush1.bf16.msra.mxu0 %v3422_v7  ;;  %2665 = vmatpush1.bf16.msra.mxu1 %v3426_v9 }
 0x651   : > { %2635 = vmatprep.subr.bf16.mxu0 %v3432_v11  ;;  %2667 = vmatprep.subr.bf16.mxu1 %v3436_v12 }
 0x654   : > { %2637 = vmatpush1.bf16.msra.mxu0 %v3442_v13  ;;  %2669 = vmatpush1.bf16.msra.mxu1 %v3446_v14 }
 0x655   : > { %2639 = vmatprep.subr.bf16.mxu0 %v3452_v17  ;;  %2671 = vmatprep.subr.bf16.mxu1 %v3456_v8 }
 0x658   : > { %2641 = vmatpush1.bf16.msra.mxu0 %v3462_v10  ;;  %2673 = vmatpush1.bf16.msra.mxu1 %v3466_v4 }
 0x659   : > { %2643 = vmatprep.subr.bf16.mxu0 %v3472_v18  ;;  %2675 = vmatprep.subr.bf16.mxu1 %v3476_v21 }
 0x65c   : > { %2645 = vmatpush1.bf16.msra.mxu0 %v3482_v24  ;;  %2677 = vmatpush1.bf16.msra.mxu1 %v3486_v27 }
 0x65d   : > { %2647 = vmatprep.subr.bf16.mxu0 %v3492_v19  ;;  %2679 = vmatprep.subr.bf16.mxu1 %v3496_v30 }
 0x660   : > { %2649 = vmatpush1.bf16.msra.mxu0 %v3502_v25  ;;  %2681 = vmatpush1.bf16.msra.mxu1 %v3506_v32 }
 0x661   : > { %2651 = vmatprep.subr.bf16.mxu0 %v3512_v29  ;;  %2683 = vmatprep.subr.bf16.mxu1 %v3516_v34 }
 0x664   : > { %2653 = vmatpush1.bf16.msra.mxu0 %v3522_v31  ;;  %2685 = vmatpush1.bf16.msra.mxu1 %v3526_v36 }
 0x665   : > { %2687 = vmatprep.subr.bf16.mxu0 %v3372_v58  ;;  %2719 = vmatprep.subr.bf16.mxu1 %v3376_v60  ;;  %v1388_v58 = vld [vmem:[%s1387_s22] ss:$8 sm:$0xf] }
 0x71a   : > { %v1455_v39 = vpop.f32.mrb[10].mxu0  ;;  %v1526_v41 = vpop.f32.mrb[10].mxu1 }
 0x71b   : > { %v1457_v48 = vpop.f32.mrb[11].mxu0  ;;  %v1528_v15 = vpop.f32.mrb[11].mxu1 }
 0x71c   : > { %v1535_v42 = vcombine.low %v1455_v39, %v1457_v48  ;;  %v1536_v26 = vcombine.low %v1526_v41, %v1528_v15 }
 0x71e   : > { %v1543_v46 = vrot.slane %v1535_v42, %v3575_v23  ;;  %v1550_v44 = vrot.slane %v1536_v26, %v3575_v23 }
 0x720   : > { %v1551_v45 = vcombine.low %v1543_v46, %v1550_v44 }
 0x722   : > { %v1558_v60 = vrot.slane %v1551_v45, %v3575_v23 }
 0x724   : > { %v1560_v43 = vadd.f32 %v1558_v60, %v1388_v58 }
 0x726   : > { %v2203_v47 = vmul.f32 -1.442695, %v1560_v43  ;;  %v1568_v16 = vrot.slane %v1560_v43, 1  ;;  %v1579_v28 = vrot.slane %v1560_v43, 3  ;;  %v1576_v20 = vrot.slane %v1560_v43, 2 }
 0x728   : > { %2858 = vpow2.f32 %v2203_v47  ;;  %v2204_v35 = vmul.f32 -1.442695, %v1568_v16  ;;  %v2205_v22 = vmul.f32 -1.442695, %v1579_v28 }
 0x72a   : > { %2860 = vpow2.f32 %v2204_v35 }
 0x72b   : > { %2862 = vpow2.f32 %v2205_v22 }
 0x732   : > { %v2859_v37 = vpop.eup %2858 }
 0x733   : > { %v1564_v38 = vadd.f32 1.0, %v2859_v37 }
 0x734   : > { %v2861_v39 = vpop.eup %2860 }
 0x735   : > { %2864 = vrcp.f32 %v1564_v38  ;;  %v1573_v41 = vadd.f32 1.0, %v2861_v39  ;;  %v2863_v48 = vpop.eup %2862 }
 0x736   : > { %2866 = vtanh.f32 %v1576_v20  ;;  %v1584_v46 = vadd.f32 1.0, %v2863_v48 }
 0x737   : > { %2868 = vrcp.f32 %v1573_v41 }
 0x738   : > { %2870 = vrcp.f32 %v1584_v46  ;;  %v1814_v46 = vld [vmem:[%s1813_s9] ss:$8 sm:$0xf] }
 0x73f   : > { %v2865_v15 = vpop.eup %2864 }
 0x740   : > { %v2867_v42 = vpop.eup %2866 }
 0x741   : > { %v2869_v26 = vpop.eup %2868  ;;  %v1588_v45 = vmul.f32 %v2867_v42, %v2865_v15 }
 0x742   : > { %v1587_v44 = vmul.f32 %v2869_v26, %v3767_v6  ;;  %v2871_v60 = vpop.eup %2870 }
 0x744   : > { %v3814_v58 = vadd.f32 %v1588_v45, %v1587_v44 }
 0x746   : > { %2872 = vtanh.f32 %v3814_v58 }
 0x750   : > { %v2873_v43 = vpop.eup %2872 }
 0x751   : > { %v1591_v47 = vmul.f32 %v2873_v43, %v2871_v60 }
 0x753   : > { %1667 = vmatmul.mubr.f32.vlgmr.msra.gmra.mrb[12].mxu0 %v1591_v47  ;;  %v2046_v16 = vrot.slane %v1591_v47, %v4015_v40  ;;  %1738 = vmatmul.mubr.f32.vlgmr.msra.gmra.mrb[12].mxu1 %v1591_v47 }
 0x754   : > { %2689 = vmatpush1.bf16.msra.mxu0 %v3380_v61  ;;  %2721 = vmatpush1.bf16.msra.mxu1 %v3384_v62 }
 0x755   : > { %v3821_v6 = vsel %vm2067_vm7, %v3775_v49, %v2046_v16  ;;  %2691 = vmatprep.subr.bf16.mxu0 %v3388_v63  ;;  %2723 = vmatprep.subr.bf16.mxu1 %v3392_v0  ;;  %v1601_v63 = vld [vmem:[%s1600_s27] ss:$8 sm:$0xf] }
 0x756   : > { %1879 = vmatprep.mubr.f32.mxu0 %v4013_v33  ;;  %1950 = vmatprep.mubr.f32.mxu1 %v4013_v33 }
 0x758   : > { %2693 = vmatpush1.bf16.msra.mxu0 %v3400_v1  ;;  %2725 = vmatpush1.bf16.msra.mxu1 %v3404_v2 }
 0x759   : > { %2695 = vmatprep.subr.bf16.mxu0 %v3410_v3  ;;  %2727 = vmatprep.subr.bf16.mxu1 %v3414_v5 }
 0x75c   : > { %2697 = vmatpush1.bf16.msra.mxu0 %v3422_v7  ;;  %2729 = vmatpush1.bf16.msra.mxu1 %v3426_v9 }
 0x75d   : > { %2699 = vmatprep.subr.bf16.mxu0 %v3432_v11  ;;  %2731 = vmatprep.subr.bf16.mxu1 %v3436_v12 }
 0x760   : > { %2701 = vmatpush1.bf16.msra.mxu0 %v3442_v13  ;;  %2733 = vmatpush1.bf16.msra.mxu1 %v3446_v14 }
 0x761   : > { %2703 = vmatprep.subr.bf16.mxu0 %v3452_v17  ;;  %2735 = vmatprep.subr.bf16.mxu1 %v3456_v8 }
 0x764   : > { %2705 = vmatpush1.bf16.msra.mxu0 %v3462_v10  ;;  %2737 = vmatpush1.bf16.msra.mxu1 %v3466_v4 }
 0x765   : > { %2707 = vmatprep.subr.bf16.mxu0 %v3472_v18  ;;  %2739 = vmatprep.subr.bf16.mxu1 %v3476_v21 }
 0x768   : > { %2709 = vmatpush1.bf16.msra.mxu0 %v3482_v24  ;;  %2741 = vmatpush1.bf16.msra.mxu1 %v3486_v27 }
 0x769   : > { %2711 = vmatprep.subr.bf16.mxu0 %v3492_v19  ;;  %2743 = vmatprep.subr.bf16.mxu1 %v3496_v30 }
 0x76c   : > { %2713 = vmatpush1.bf16.msra.mxu0 %v3502_v25  ;;  %2745 = vmatpush1.bf16.msra.mxu1 %v3506_v32 }
 0x76d   : > { %2715 = vmatprep.subr.bf16.mxu0 %v3512_v29  ;;  %2747 = vmatprep.subr.bf16.mxu1 %v3516_v34 }
 0x770   : > { %2717 = vmatpush1.bf16.msra.mxu0 %v3522_v31  ;;  %2749 = vmatpush1.bf16.msra.mxu1 %v3526_v36 }
 0x826   : > { %v1668_v18 = vpop.f32.mrb[12].mxu0  ;;  %v1739_v21 = vpop.f32.mrb[12].mxu1 }
 0x827   : > { %v1670_v24 = vpop.f32.mrb[13].mxu0  ;;  %v1741_v27 = vpop.f32.mrb[13].mxu1 }
 0x828   : > { %v1748_v30 = vcombine.low %v1668_v18, %v1670_v24  ;;  %v1749_v61 = vcombine.low %v1739_v21, %v1741_v27 }
 0x82a   : > { %v1756_v32 = vrot.slane %v1748_v30, %v3575_v23  ;;  %v1763_v62 = vrot.slane %v1749_v61, %v3575_v23 }
 0x82c   : > { %v1764_v34 = vcombine.low %v1756_v32, %v1763_v62 }
 0x82e   : > { %v1771_v36 = vrot.slane %v1764_v34, %v3575_v23 }
 0x830   : > { %v1773_v0 = vadd.f32 %v1771_v36, %v1601_v63 }
 0x832   : > { %v2208_v1 = vmul.f32 -1.442695, %v1773_v0  ;;  %v1781_v2 = vrot.slane %v1773_v0, 1  ;;  %v1792_v5 = vrot.slane %v1773_v0, 3  ;;  %v1789_v11 = vrot.slane %v1773_v0, 2 }
 0x834   : > { %2874 = vpow2.f32 %v2208_v1  ;;  %v2209_v3 = vmul.f32 -1.442695, %v1781_v2  ;;  %v2210_v7 = vmul.f32 -1.442695, %v1792_v5 }
 0x836   : > { %2876 = vpow2.f32 %v2209_v3 }
 0x837   : > { %2878 = vpow2.f32 %v2210_v7 }
 0x83e   : > { %v2875_v9 = vpop.eup %2874 }
 0x83f   : > { %v1777_v12 = vadd.f32 1.0, %v2875_v9 }
 0x840   : > { %v2877_v13 = vpop.eup %2876 }
 0x841   : > { %2880 = vrcp.f32 %v1777_v12  ;;  %v1786_v14 = vadd.f32 1.0, %v2877_v13  ;;  %v2879_v17 = vpop.eup %2878 }
 0x842   : > { %2882 = vtanh.f32 %v1789_v11  ;;  %v1797_v19 = vadd.f32 1.0, %v2879_v17  ;;  %v4018_v11 = vlaneseq (%p311_p0) }
 0x843   : > { %2884 = vrcp.f32 %v1786_v14 }
 0x844   : > { %2886 = vrcp.f32 %v1797_v19  ;;  %v2080_v12 = vand.u32 (%p311_p0), 127, %v4018_v11 }
 0x846   :  { %vm2081_vm10 = vcmp.lt.s32.totalorder (%p311_p0), %v2080_v12, 16 }
 0x84b   : > { %v2881_v8 = vpop.eup %2880 }
 0x84c   : > { %v2883_v10 = vpop.eup %2882 }
 0x84d   : > { %v2885_v4 = vpop.eup %2884  ;;  %v1801_v29 = vmul.f32 %v2883_v10, %v2881_v8 }
 0x84e   : > { %v1800_v25 = vmul.f32 %v2885_v4, %v3814_v58  ;;  %v2887_v33 = vpop.eup %2886 }
 0x850   : > { %v1802_v31 = vadd.f32 %v1801_v29, %v1800_v25 }
 0x852   : > { %2888 = vtanh.f32 %v1802_v31 }
 0x85c   : > { %v2889_v49 = vpop.eup %2888 }
 0x85d   : > { %v1804_v35 = vmul.f32 %v2889_v49, %v2887_v33 }
 0x85f   : > { %1880 = vmatmul.mubr.f32.vlgmr.msra.gmra.mrb[14].mxu0 %v1804_v35  ;;  %v2052_v28 = vrot.slane %v1804_v35, %v4015_v40  ;;  %1951 = vmatmul.mubr.f32.vlgmr.msra.gmra.mrb[14].mxu1 %v1804_v35 }
 0x861   : > { %v2070_v22 = vsel %vm2069_vm8, %v3821_v6, %v2052_v28 }
 0x932   : > { %v1881_v37 = vpop.f32.mrb[14].mxu0  ;;  %v1952_v20 = vpop.f32.mrb[14].mxu1 }
 0x933   : > { %v1883_v38 = vpop.f32.mrb[15].mxu0  ;;  %v1954_v39 = vpop.f32.mrb[15].mxu1 }
 0x934   : > { %v1961_v41 = vcombine.low %v1881_v37, %v1883_v38  ;;  %v1962_v48 = vcombine.low %v1952_v20, %v1954_v39 }
 0x936   : > { %v1969_v15 = vrot.slane %v1961_v41, %v3575_v23  ;;  %v1976_v42 = vrot.slane %v1962_v48, %v3575_v23 }
 0x938   : > { %v1977_v26 = vcombine.low %v1969_v15, %v1976_v42 }
 0x93a   : > { %v1984_v44 = vrot.slane %v1977_v26, %v3575_v23 }
 0x93c   : > { %v1986_v45 = vadd.f32 %v1984_v44, %v1814_v46 }
 0x93e   : > { %v2213_v58 = vmul.f32 -1.442695, %v1986_v45  ;;  %v1994_v60 = vrot.slane %v1986_v45, 1  ;;  %v2005_v47 = vrot.slane %v1986_v45, 3  ;;  %v2002_v18 = vrot.slane %v1986_v45, 2 }
 0x940   : > { %2890 = vpow2.f32 %v2213_v58  ;;  %v2214_v43 = vmul.f32 -1.442695, %v1994_v60  ;;  %v2215_v16 = vmul.f32 -1.442695, %v2005_v47 }
 0x942   : > { %2892 = vpow2.f32 %v2214_v43 }
 0x943   : > { %2894 = vpow2.f32 %v2215_v16 }
 0x94a   : > { %v2891_v6 = vpop.eup %2890 }
 0x94b   : > { %v1990_v21 = vadd.f32 1.0, %v2891_v6 }
 0x94c   : > { %v2893_v24 = vpop.eup %2892 }
 0x94d   : > { %2896 = vrcp.f32 %v1990_v21  ;;  %v1999_v27 = vadd.f32 1.0, %v2893_v24  ;;  %v2895_v30 = vpop.eup %2894 }
 0x94e   : > { %2898 = vtanh.f32 %v2002_v18  ;;  %v2010_v62 = vadd.f32 1.0, %v2895_v30 }
 0x94f   : > { %2900 = vrcp.f32 %v1999_v27 }
 0x950   : > { %2902 = vrcp.f32 %v2010_v62 }
 0x957   : > { %v2897_v23 = vpop.eup %2896 }
 0x958   : > { %v2899_v61 = vpop.eup %2898 }
 0x959   : > { %v2901_v32 = vpop.eup %2900  ;;  %v2014_v63 = vmul.f32 %v2899_v61, %v2897_v23 }
 0x95a   : > { %v2013_v34 = vmul.f32 %v2901_v32, %v1802_v31  ;;  %v2903_v0 = vpop.eup %2902 }
 0x95c   : > { %v2015_v36 = vadd.f32 %v2014_v63, %v2013_v34  }
 0x95e   : > { %2904 = vtanh.f32 %v2015_v36  ;;  %v4016_v16 = vmov %v2015_v36  ;;  %2076 = vst [vmem:[#allocation5] sm:$0x1] (%p311_p0), %v2015_v36 }
 0x968   : > { %v2905_v1 = vpop.eup %2904  ;;  %313 = sbr.rel (!%p311_p0) target bundleno = 230 (0xe6), region = 64 }
 0x969   : > { %v2017_v2 = vmul.f32 %v2905_v1, %v2903_v0  }
 0x96b   : > { %v2058_v3 = vrot.slane %v2017_v2, %v4015_v40  ;;  %v4017_v15 = vmov %v2017_v2  ;;  %2075 = vst [vmem:[#allocation4] sm:$0x1] (%p311_p0), %v2017_v2  ;;  %v2217_v40 = vld [vmem:[%s3888_s5] ss:$0 sm:$0xff] (%p311_p0) }
 0x96d   : > { %v2072_v5 = vsel %vm2071_vm9, %v2070_v22, %v2058_v3 }
 0x96e   : > { %2074 = vst [vmem:[%s2073_s10] sm:$0xff] %v2072_v5 }
 0x975   :  { %v2077_v7 = vld [vmem:[#allocation3] sm:$0xff]  ;;  %v2078_v9 = vld [vmem:[#allocation3 + $0x8] sm:$0xff] }
 0x976   :  { %2082 = vadd.xlane.f32.xlu0 %v2077_v7 }
 0x97a   :  { %2084 = vadd.xlane.f32.xlu0 %v2078_v9 }
 0xa03   :  { %v2083_v13 = vpop.xlane.xlu0 %2082 }
 0xa04   :  { %v2086_v14 = vmul.f32 0.0625, %v2083_v13 }
 0xa06   :  { %v2088_v17 = vsub.f32 %v2077_v7, %v2086_v14 }
 0xa07   :  { %v2085_v8 = vpop.xlane.xlu0 %2084 }
 0xa08   :  { %v2087_v10 = vmul.f32 0.0625, %v2085_v8  ;;  %v2090_v4 = vsel %vm2081_vm10, %v2088_v17, 0.0 }
 0xa09   :  { %v2092_v19 = vmul.f32 %v2090_v4, %v2090_v4 }
 0xa0a   :  { %v2089_v25 = vsub.f32 %v2078_v9, %v2087_v10 }
 0xa0b   :  { %2094 = vadd.xlane.f32.xlu1 %v2092_v19 }
 0xa0c   :  { %v2091_v29 = vsel %vm2081_vm10, %v2089_v25, 0.0 }
 0xa0d   :  { %v2093_v31 = vmul.f32 %v2091_v29, %v2091_v29 }
 0xa0f   :  { %2096 = vadd.xlane.f32.xlu1 %v2093_v31 }
 0xa98   :  { %v2095_v50 = vpop.xlane.xlu1 %2094 }
 0xa99   :  { %v2098_v51 = vmul.f32 0.0625, %v2095_v50 }
 0xa9b   :  { %v2100_v52 = vadd.f32 1e-05, %v2098_v51 }
 0xa9c   :  { %v2097_v53 = vpop.xlane.xlu1 %2096 }
 0xa9d   :  { %2906 = vrsqrt.f32 %v2100_v52  ;;  %v2099_v54 = vmul.f32 0.0625, %v2097_v53 }
 0xa9f   :  { %v2101_v55 = vadd.f32 1e-05, %v2099_v54 }
 0xaa1   :  { %2908 = vrsqrt.f32 %v2101_v55 }
 0xaa7   :  { %v2907_v56 = vpop.eup %2906 }
 0xaa8   :  { %v2104_v59 = vmul.f32 %v2907_v56, %v2088_v17 }
 0xaaa   :  { %v2113_v33 = vmul.f32 %v2216_v57, %v2104_v59 }
 0xaab   :  { %v2909_v49 = vpop.eup %2908 }
 0xaac   :  { %v2122_v35 = vadd.f32 %v2217_v40, %v2113_v33  ;;  %v2105_v28 = vmul.f32 %v2909_v49, %v2089_v25 }
 0xaae   :  { %2125 = vst.msk [vmem:[%s3889_s6] sm:$0xff] %vm2124_vm11, %v2122_v35  ;;  %v2114_v22 = vmul.f32 %v2216_v57, %v2105_v28 }
 0xab0   :  { %v2123_v37 = vadd.f32 %v2217_v40, %v2114_v22 }
 0xab2   :  { %2126 = vst.msk [vmem:[%s3889_s6 + $0x8] sm:$0xff] %vm2124_vm11, %v2123_v37 }

</bundles_post_ra>
